<compile_context>
chip_gen: v6e
topology: v6e:2x2x1
jax: 0.10.0
libtpu: 0.0.40
codegen_flags: <defaults>
</compile_context>

<pallas_src>
import functools

import jax
import jax.numpy as jnp
from jax import lax
from jax.experimental import pallas as pl
from jax.experimental.pallas import tpu as pltpu


def _round_up(x, m):
    return ((x + m - 1) // m) * m


# ------------------------------ fused kernel --------------------------------

def _fused_kernel(B, T, HP, x_ref, enc_w_ref, enc_b_ref, dec_w_ref, dec_b_ref,
                  wih_ref, whh_ref, blstm_ref,
                  lat_ref, ae_ref, pred_lat_ref, pred_ref):
    """encode -> AE decode -> unrolled LSTM -> per-step latent decode.

    2-D operands are batch-major: row = b * T + t.  Gate order is i, f, g, o
    (PyTorch nn.LSTM); each gate occupies a lane-dense HP(=128)-wide column
    block of the padded 4*HP gate matrix.  Padded lanes are exactly zero.
    """
    S = T - 1
    DP = dec_w_ref.shape[1]

    x = x_ref[...]                                    # (B*T, DP)
    enc_w = enc_w_ref[...]                            # (DP, HP)
    dec_w = dec_w_ref[...]                            # (HP, DP)
    dec_b = dec_b_ref[...]                            # (1,  DP)

    # ---- encoder ----
    lat = jnp.dot(x, enc_w, preferred_element_type=jnp.float32) + enc_b_ref[...]
    lat_ref[...] = lat                                # (B*T, HP)

    # ---- autoencoder reconstruction decode ----
    ae_ref[...] = jnp.dot(lat, dec_w, preferred_element_type=jnp.float32) + dec_b

    # ---- LSTM input projection hoisted out of the recurrence (bias folded) ----
    xw = jnp.dot(lat, wih_ref[...], preferred_element_type=jnp.float32) + blstm_ref[...]
    whh = whh_ref[...]                                # (HP, 4*HP)

    # h0 = latent of frame 0 of each batch element (h_0_latent=True), c0 = 0.
    h = jnp.concatenate([lat[b * T:b * T + 1, :] for b in range(B)], axis=0)  # (B, HP)
    c = jnp.zeros_like(h)
    dec_b_rows = jnp.broadcast_to(dec_b, (B, DP))     # hoisted out of the loop

    # Fully unrolled recurrence: S is small and static.
    for t in range(S):
        xg = jnp.concatenate(
            [xw[b * T + t:b * T + t + 1, :] for b in range(B)], axis=0)  # (B, 4*HP)
        gates = xg + jnp.dot(h, whh, preferred_element_type=jnp.float32)
        i_g = jax.nn.sigmoid(gates[:, 0 * HP:1 * HP])
        f_g = jax.nn.sigmoid(gates[:, 1 * HP:2 * HP])
        g_g = jnp.tanh(gates[:, 2 * HP:3 * HP])
        o_g = jax.nn.sigmoid(gates[:, 3 * HP:4 * HP])
        c = f_g * c + i_g * g_g
        h = o_g * jnp.tanh(c)
        pred_lat_ref[:, t, :] = h
        pred_ref[:, t, :] = (
            jnp.dot(h, dec_w, preferred_element_type=jnp.float32) + dec_b_rows)


# ----------------------------- padding helpers -------------------------------

def _pad_right_2d(a, rows, cols):
    out = jnp.zeros((rows, cols), jnp.float32)
    return out.at[:a.shape[0], :a.shape[1]].set(a)


def _pad_lstm_weight(w, H, HP):
    # w: (in_dim, 4*H) with gate blocks [i|f|g|o] -> (HP, 4*HP), zero padding.
    in_dim = w.shape[0]
    out = jnp.zeros((HP, 4 * HP), jnp.float32)
    for k in range(4):
        out = out.at[:in_dim, k * HP:k * HP + H].set(w[:, k * H:(k + 1) * H])
    return out


def _pad_lstm_bias(bias, H, HP):
    out = jnp.zeros((1, 4 * HP), jnp.float32)
    for k in range(4):
        out = out.at[0, k * HP:k * HP + H].set(bias[k * H:(k + 1) * H])
    return out


# -------------------------------- wrapper ------------------------------------

@jax.jit
def simple_latent_prediction_forward(x_in, params):
    """Mirrors SimpleLatentPredictionNet.forward (lstm, num_layers=1, h_0_latent=True)."""
    b, t, c, hh, ww = x_in.shape
    d_img = c * hh * ww
    hsz = params["enc_w"].shape[1]
    HP = _round_up(hsz, 128)          # lane-dense hidden
    DP = _round_up(d_img, 128)        # lane-dense image dim
    n = b * t
    s = t - 1

    # Pad parameters / input once (zero padding keeps the math exact).
    enc_w_p = _pad_right_2d(params["enc_w"], DP, HP)
    enc_b_p = _pad_right_2d(params["enc_b"].reshape(1, -1), 1, HP)
    dec_w_p = _pad_right_2d(params["dec_w"], HP, DP)
    dec_b_p = _pad_right_2d(params["dec_b"].reshape(1, -1), 1, DP)
    wih_p = _pad_lstm_weight(params["w_ih_t"], hsz, HP)
    whh_p = _pad_lstm_weight(params["w_hh_t"], hsz, HP)
    blstm_p = _pad_lstm_bias(params["b_lstm"], hsz, HP)
    x2d_p = _pad_right_2d(x_in.reshape(n, d_img), n, DP)

    kernel = functools.partial(_fused_kernel, b, t, HP)
    vmem = pl.BlockSpec(memory_space=pltpu.MemorySpace.VMEM)

    lat_p, ae_p, pred_lat_p, pred_p = pl.pallas_call(
        kernel,
        out_shape=(
            jax.ShapeDtypeStruct((n, HP), jnp.float32),     # x_in_lat (padded)
            jax.ShapeDtypeStruct((n, DP), jnp.float32),     # x_out_ae (padded)
            jax.ShapeDtypeStruct((b, s, HP), jnp.float32),  # x_out_lat (padded)
            jax.ShapeDtypeStruct((b, s, DP), jnp.float32),  # x_out (padded)
        ),
        in_specs=[vmem] * 8,
        out_specs=(vmem, vmem, vmem, vmem),
    )(x2d_p, enc_w_p, enc_b_p, dec_w_p, dec_b_p, wih_p, whh_p, blstm_p)

    x_in_lat = lat_p[:, :hsz].reshape(b, t, hsz)
    x_out_ae = ae_p[:, :d_img].reshape(b, t, c, hh, ww)
    x_out_lat = pred_lat_p[:, :, :hsz]
    x_out = pred_p[:, :, :d_img].reshape(b, s, c, hh, ww)
    return x_out, x_out_ae, x_out_lat, x_in_lat


# --------------------------- pure-JAX reference ------------------------------

def _forward_ref(x_in, params):
    b, t, c, hh, ww = x_in.shape
    d_img = c * hh * ww
    hsz = params["enc_w"].shape[1]

    x_flat = x_in.reshape(b * t, d_img)
    x_in_lat_flat = x_flat @ params["enc_w"] + params["enc_b"]
    x_out_ae = (x_in_lat_flat @ params["dec_w"] + params["dec_b"]).reshape(b, t, c, hh, ww)
    x_in_lat = x_in_lat_flat.reshape(b, t, -1)

    h0 = x_in_lat[:, 0, :]
    c0 = jnp.zeros_like(h0)
    x_seq_tm = jnp.transpose(x_in_lat[:, :-1, :], (1, 0, 2))

    def step(carry, x_t):
        h, cc = carry
        gates = x_t @ params["w_ih_t"] + h @ params["w_hh_t"] + params["b_lstm"]
        i_g = jax.nn.sigmoid(gates[:, :hsz])
        f_g = jax.nn.sigmoid(gates[:, hsz:2 * hsz])
        g_g = jnp.tanh(gates[:, 2 * hsz:3 * hsz])
        o_g = jax.nn.sigmoid(gates[:, 3 * hsz:])
        cc = f_g * cc + i_g * g_g
        h = o_g * jnp.tanh(cc)
        return (h, cc), h

    (_, _), hs = lax.scan(step, (h0, c0), x_seq_tm)
    x_out_lat = jnp.transpose(hs, (1, 0, 2))
    x_out = (x_out_lat.reshape(-1, hsz) @ params["dec_w"] + params["dec_b"]).reshape(
        b, t - 1, c, hh, ww)
    return x_out, x_out_ae, x_out_lat, x_in_lat


# ---------------------------------- main -------------------------------------

if __name__ == "__main__":
    # Small shapes: batch=2, seq+1=4 frames, C=3, H=W=8, latent=hidden=32.
    B, T, C, Himg, Wimg = 2, 4, 3, 8, 8
    HIDDEN = 32
    D_IMG = C * Himg * Wimg

    key = jax.random.PRNGKey(0)
    k_x, k_ew, k_eb, k_dw, k_db, k_wih, k_whh, k_bih, k_bhh = jax.random.split(key, 9)

    x_in = jax.random.normal(k_x, (B, T, C, Himg, Wimg), dtype=jnp.float32)

    params = {
        # synthetic linear autoencoder
        "enc_w": 0.05 * jax.random.normal(k_ew, (D_IMG, HIDDEN), dtype=jnp.float32),
        "enc_b": 0.05 * jax.random.normal(k_eb, (HIDDEN,), dtype=jnp.float32),
        "dec_w": 0.05 * jax.random.normal(k_dw, (HIDDEN, D_IMG), dtype=jnp.float32),
        "dec_b": 0.05 * jax.random.normal(k_db, (D_IMG,), dtype=jnp.float32),
        # LSTM weights stored transposed (x @ W) relative to torch (4H, in)
        "w_ih_t": 0.1 * jax.random.normal(k_wih, (HIDDEN, 4 * HIDDEN), dtype=jnp.float32),
        "w_hh_t": 0.1 * jax.random.normal(k_whh, (HIDDEN, 4 * HIDDEN), dtype=jnp.float32),
        # torch uses separate b_ih + b_hh; their sum is equivalent
        "b_lstm": 0.1 * (jax.random.normal(k_bih, (4 * HIDDEN,), dtype=jnp.float32)
                         + jax.random.normal(k_bhh, (4 * HIDDEN,), dtype=jnp.float32)),
    }

    outs = simple_latent_prediction_forward(x_in, params)
    outs = jax.block_until_ready(outs)
    x_out, x_out_ae, x_out_lat, x_in_lat = outs

    assert x_out.shape == (B, T - 1, C, Himg, Wimg)
    assert x_out_ae.shape == (B, T, C, Himg, Wimg)
    assert x_out_lat.shape == (B, T - 1, HIDDEN)
    assert x_in_lat.shape == (B, T, HIDDEN)

    ref = _forward_ref(x_in, params)
    for got, want in zip(outs, ref):
        assert jnp.allclose(got, want, rtol=1e-3, atol=1e-3), "mismatch vs reference"

    print("KERNEL_OK")
</pallas_src>

<mosaic_0001>
module attributes {stable_mosaic.version = 11 : i64} {
  func.func @_fused_kernel(%arg0: memref<8x256xf32, #tpu.memory_space<vmem>>, %arg1: memref<256x128xf32, #tpu.memory_space<vmem>>, %arg2: memref<1x128xf32, #tpu.memory_space<vmem>>, %arg3: memref<128x256xf32, #tpu.memory_space<vmem>>, %arg4: memref<1x256xf32, #tpu.memory_space<vmem>>, %arg5: memref<128x512xf32, #tpu.memory_space<vmem>>, %arg6: memref<128x512xf32, #tpu.memory_space<vmem>>, %arg7: memref<1x512xf32, #tpu.memory_space<vmem>>, %arg8: memref<8x128xf32, #tpu.memory_space<vmem>>, %arg9: memref<8x256xf32, #tpu.memory_space<vmem>>, %arg10: memref<2x3x128xf32, #tpu.memory_space<vmem>>, %arg11: memref<2x3x256xf32, #tpu.memory_space<vmem>>) attributes {dimension_semantics = [], scalar_prefetch = 0 : i64, scratch_operands = 0 : i64, tpu.core_type = #tpu.core_type<tc>} {
    %c0 = arith.constant 0 : index
    %c0_0 = arith.constant 0 : index
    %0 = vector.load %arg0[%c0, %c0_0] : memref<8x256xf32, #tpu.memory_space<vmem>>, vector<8x256xf32>
    %c0_1 = arith.constant 0 : index
    %c0_2 = arith.constant 0 : index
    %1 = vector.load %arg1[%c0_1, %c0_2] : memref<256x128xf32, #tpu.memory_space<vmem>>, vector<256x128xf32>
    %c0_3 = arith.constant 0 : index
    %c0_4 = arith.constant 0 : index
    %2 = vector.load %arg3[%c0_3, %c0_4] : memref<128x256xf32, #tpu.memory_space<vmem>>, vector<128x256xf32>
    %c0_5 = arith.constant 0 : index
    %c0_6 = arith.constant 0 : index
    %3 = vector.load %arg4[%c0_5, %c0_6] : memref<1x256xf32, #tpu.memory_space<vmem>>, vector<1x256xf32>
    %cst = arith.constant dense<0.000000e+00> : vector<8x128xf32>
    %4 = tpu.matmul %0, %1, %cst {dimension_numbers = #tpu.dot_dimension_numbers<[1], [0], [0], [1], [0, 0, 1, 1], [], []>} : vector<8x256xf32>, vector<256x128xf32>, vector<8x128xf32> -> vector<8x128xf32>
    %c0_7 = arith.constant 0 : index
    %c0_8 = arith.constant 0 : index
    %5 = vector.load %arg2[%c0_7, %c0_8] : memref<1x128xf32, #tpu.memory_space<vmem>>, vector<1x128xf32>
    %6 = vector.broadcast %5 : vector<1x128xf32> to vector<8x128xf32>
    %7 = arith.addf %4, %6 : vector<8x128xf32>
    %c0_9 = arith.constant 0 : index
    %c0_10 = arith.constant 0 : index
    %8 = vector.load %arg8[%c0_9, %c0_10] : memref<8x128xf32, #tpu.memory_space<vmem>>, vector<8x128xf32>
    tpu.vector_store %arg8[%c0_9, %c0_10], %7 {strides = array<i32>} : memref<8x128xf32, #tpu.memory_space<vmem>>, vector<8x128xf32>,
    %cst_11 = arith.constant dense<0.000000e+00> : vector<8x256xf32>
    %9 = tpu.matmul %7, %2, %cst_11 {dimension_numbers = #tpu.dot_dimension_numbers<[1], [0], [0], [1], [0, 0, 1, 1], [], []>} : vector<8x128xf32>, vector<128x256xf32>, vector<8x256xf32> -> vector<8x256xf32>
    %10 = vector.broadcast %3 : vector<1x256xf32> to vector<8x256xf32>
    %11 = arith.addf %9, %10 : vector<8x256xf32>
    %c0_12 = arith.constant 0 : index
    %c0_13 = arith.constant 0 : index
    %12 = vector.load %arg9[%c0_12, %c0_13] : memref<8x256xf32, #tpu.memory_space<vmem>>, vector<8x256xf32>
    tpu.vector_store %arg9[%c0_12, %c0_13], %11 {strides = array<i32>} : memref<8x256xf32, #tpu.memory_space<vmem>>, vector<8x256xf32>,
    %c0_14 = arith.constant 0 : index
    %c0_15 = arith.constant 0 : index
    %13 = vector.load %arg5[%c0_14, %c0_15] : memref<128x512xf32, #tpu.memory_space<vmem>>, vector<128x512xf32>
    %cst_16 = arith.constant dense<0.000000e+00> : vector<8x512xf32>
    %14 = tpu.matmul %7, %13, %cst_16 {dimension_numbers = #tpu.dot_dimension_numbers<[1], [0], [0], [1], [0, 0, 1, 1], [], []>} : vector<8x128xf32>, vector<128x512xf32>, vector<8x512xf32> -> vector<8x512xf32>
    %c0_17 = arith.constant 0 : index
    %c0_18 = arith.constant 0 : index
    %15 = vector.load %arg7[%c0_17, %c0_18] : memref<1x512xf32, #tpu.memory_space<vmem>>, vector<1x512xf32>
    %16 = vector.broadcast %15 : vector<1x512xf32> to vector<8x512xf32>
    %17 = arith.addf %14, %16 : vector<8x512xf32>
    %c0_19 = arith.constant 0 : index
    %c0_20 = arith.constant 0 : index
    %18 = vector.load %arg6[%c0_19, %c0_20] : memref<128x512xf32, #tpu.memory_space<vmem>>, vector<128x512xf32>
    %19 = vector.extract_strided_slice %7 {offsets = [0, 0], sizes = [1, 128], strides = [1, 1]} : vector<8x128xf32> to vector<1x128xf32>
    %20 = vector.extract_strided_slice %7 {offsets = [4, 0], sizes = [1, 128], strides = [1, 1]} : vector<8x128xf32> to vector<1x128xf32>
    %21 = tpu.concatenate %19, %20 in 0 : vector<1x128xf32>, vector<1x128xf32> -> vector<2x128xf32>
    %cst_21 = arith.constant 0.000000e+00 : f32
    %22 = vector.broadcast %cst_21 : f32 to vector<2x128xf32>
    %23 = vector.shape_cast %3 : vector<1x256xf32> to vector<1x256xf32>
    %24 = vector.broadcast %23 : vector<1x256xf32> to vector<2x256xf32>
    %25 = vector.extract_strided_slice %17 {offsets = [0, 0], sizes = [1, 512], strides = [1, 1]} : vector<8x512xf32> to vector<1x512xf32>
    %26 = vector.extract_strided_slice %17 {offsets = [4, 0], sizes = [1, 512], strides = [1, 1]} : vector<8x512xf32> to vector<1x512xf32>
    %27 = tpu.concatenate %25, %26 in 0 : vector<1x512xf32>, vector<1x512xf32> -> vector<2x512xf32>
    %cst_22 = arith.constant dense<0.000000e+00> : vector<2x512xf32>
    %28 = tpu.matmul %21, %18, %cst_22 {dimension_numbers = #tpu.dot_dimension_numbers<[1], [0], [0], [1], [0, 0, 1, 1], [], []>} : vector<2x128xf32>, vector<128x512xf32>, vector<2x512xf32> -> vector<2x512xf32>
    %29 = arith.addf %27, %28 : vector<2x512xf32>
    %30 = vector.extract_strided_slice %29 {offsets = [0, 0], sizes = [2, 128], strides = [1, 1]} : vector<2x512xf32> to vector<2x128xf32>
    %31 = arith.negf %30 : vector<2x128xf32>
    %32 = math.exp %31 : vector<2x128xf32>
    %cst_23 = arith.constant 1.000000e+00 : f32
    %33 = vector.broadcast %cst_23 : f32 to vector<2x128xf32>
    %34 = arith.addf %33, %32 : vector<2x128xf32>
    %35 = arith.divf %33, %34 : vector<2x128xf32>
    %36 = vector.extract_strided_slice %29 {offsets = [0, 128], sizes = [2, 128], strides = [1, 1]} : vector<2x512xf32> to vector<2x128xf32>
    %37 = arith.negf %36 : vector<2x128xf32>
    %38 = math.exp %37 : vector<2x128xf32>
    %cst_24 = arith.constant 1.000000e+00 : f32
    %39 = vector.broadcast %cst_24 : f32 to vector<2x128xf32>
    %40 = arith.addf %39, %38 : vector<2x128xf32>
    %41 = arith.divf %39, %40 : vector<2x128xf32>
    %42 = vector.extract_strided_slice %29 {offsets = [0, 256], sizes = [2, 128], strides = [1, 1]} : vector<2x512xf32> to vector<2x128xf32>
    %43 = math.tanh %42 : vector<2x128xf32>
    %44 = vector.extract_strided_slice %29 {offsets = [0, 384], sizes = [2, 128], strides = [1, 1]} : vector<2x512xf32> to vector<2x128xf32>
    %45 = arith.negf %44 : vector<2x128xf32>
    %46 = math.exp %45 : vector<2x128xf32>
    %cst_25 = arith.constant 1.000000e+00 : f32
    %47 = vector.broadcast %cst_25 : f32 to vector<2x128xf32>
    %48 = arith.addf %47, %46 : vector<2x128xf32>
    %49 = arith.divf %47, %48 : vector<2x128xf32>
    %50 = arith.mulf %41, %22 : vector<2x128xf32>
    %51 = arith.mulf %35, %43 : vector<2x128xf32>
    %52 = arith.addf %50, %51 : vector<2x128xf32>
    %53 = math.tanh %52 : vector<2x128xf32>
    %54 = arith.mulf %49, %53 : vector<2x128xf32>
    %c0_26 = arith.constant 0 : index
    %c0_27 = arith.constant 0 : index
    %c0_28 = arith.constant 0 : index
    %55 = vector.load %arg10[%c0_26, %c0_27, %c0_28] : memref<2x3x128xf32, #tpu.memory_space<vmem>>, vector<2x1x128xf32>
    %56 = vector.shape_cast %55 : vector<2x1x128xf32> to vector<2x128xf32>
    %57 = vector.shape_cast %54 : vector<2x128xf32> to vector<2x1x128xf32>
    tpu.vector_store %arg10[%c0_26, %c0_27, %c0_28], %57 {strides = array<i32>} : memref<2x3x128xf32, #tpu.memory_space<vmem>>, vector<2x1x128xf32>,
    %cst_29 = arith.constant dense<0.000000e+00> : vector<2x256xf32>
    %58 = tpu.matmul %54, %2, %cst_29 {dimension_numbers = #tpu.dot_dimension_numbers<[1], [0], [0], [1], [0, 0, 1, 1], [], []>} : vector<2x128xf32>, vector<128x256xf32>, vector<2x256xf32> -> vector<2x256xf32>
    %59 = arith.addf %58, %24 : vector<2x256xf32>
    %c0_30 = arith.constant 0 : index
    %c0_31 = arith.constant 0 : index
    %c0_32 = arith.constant 0 : index
    %60 = vector.load %arg11[%c0_30, %c0_31, %c0_32] : memref<2x3x256xf32, #tpu.memory_space<vmem>>, vector<2x1x256xf32>
    %61 = vector.shape_cast %60 : vector<2x1x256xf32> to vector<2x256xf32>
    %62 = vector.shape_cast %59 : vector<2x256xf32> to vector<2x1x256xf32>
    tpu.vector_store %arg11[%c0_30, %c0_31, %c0_32], %62 {strides = array<i32>} : memref<2x3x256xf32, #tpu.memory_space<vmem>>, vector<2x1x256xf32>,
    %63 = vector.extract_strided_slice %17 {offsets = [1, 0], sizes = [1, 512], strides = [1, 1]} : vector<8x512xf32> to vector<1x512xf32>
    %64 = vector.extract_strided_slice %17 {offsets = [5, 0], sizes = [1, 512], strides = [1, 1]} : vector<8x512xf32> to vector<1x512xf32>
    %65 = tpu.concatenate %63, %64 in 0 : vector<1x512xf32>, vector<1x512xf32> -> vector<2x512xf32>
    %cst_33 = arith.constant dense<0.000000e+00> : vector<2x512xf32>
    %66 = tpu.matmul %54, %18, %cst_33 {dimension_numbers = #tpu.dot_dimension_numbers<[1], [0], [0], [1], [0, 0, 1, 1], [], []>} : vector<2x128xf32>, vector<128x512xf32>, vector<2x512xf32> -> vector<2x512xf32>
    %67 = arith.addf %65, %66 : vector<2x512xf32>
    %68 = vector.extract_strided_slice %67 {offsets = [0, 0], sizes = [2, 128], strides = [1, 1]} : vector<2x512xf32> to vector<2x128xf32>
    %69 = arith.negf %68 : vector<2x128xf32>
    %70 = math.exp %69 : vector<2x128xf32>
    %cst_34 = arith.constant 1.000000e+00 : f32
    %71 = vector.broadcast %cst_34 : f32 to vector<2x128xf32>
    %72 = arith.addf %71, %70 : vector<2x128xf32>
    %73 = arith.divf %71, %72 : vector<2x128xf32>
    %74 = vector.extract_strided_slice %67 {offsets = [0, 128], sizes = [2, 128], strides = [1, 1]} : vector<2x512xf32> to vector<2x128xf32>
    %75 = arith.negf %74 : vector<2x128xf32>
    %76 = math.exp %75 : vector<2x128xf32>
    %cst_35 = arith.constant 1.000000e+00 : f32
    %77 = vector.broadcast %cst_35 : f32 to vector<2x128xf32>
    %78 = arith.addf %77, %76 : vector<2x128xf32>
    %79 = arith.divf %77, %78 : vector<2x128xf32>
    %80 = vector.extract_strided_slice %67 {offsets = [0, 256], sizes = [2, 128], strides = [1, 1]} : vector<2x512xf32> to vector<2x128xf32>
    %81 = math.tanh %80 : vector<2x128xf32>
    %82 = vector.extract_strided_slice %67 {offsets = [0, 384], sizes = [2, 128], strides = [1, 1]} : vector<2x512xf32> to vector<2x128xf32>
    %83 = arith.negf %82 : vector<2x128xf32>
    %84 = math.exp %83 : vector<2x128xf32>
    %cst_36 = arith.constant 1.000000e+00 : f32
    %85 = vector.broadcast %cst_36 : f32 to vector<2x128xf32>
    %86 = arith.addf %85, %84 : vector<2x128xf32>
    %87 = arith.divf %85, %86 : vector<2x128xf32>
    %88 = arith.mulf %79, %52 : vector<2x128xf32>
    %89 = arith.mulf %73, %81 : vector<2x128xf32>
    %90 = arith.addf %88, %89 : vector<2x128xf32>
    %91 = math.tanh %90 : vector<2x128xf32>
    %92 = arith.mulf %87, %91 : vector<2x128xf32>
    %c0_37 = arith.constant 0 : index
    %c1 = arith.constant 1 : index
    %c0_38 = arith.constant 0 : index
    %93 = vector.load %arg10[%c0_37, %c1, %c0_38] : memref<2x3x128xf32, #tpu.memory_space<vmem>>, vector<2x1x128xf32>
    %94 = vector.shape_cast %93 : vector<2x1x128xf32> to vector<2x128xf32>
    %95 = vector.shape_cast %92 : vector<2x128xf32> to vector<2x1x128xf32>
    tpu.vector_store %arg10[%c0_37, %c1, %c0_38], %95 {strides = array<i32>} : memref<2x3x128xf32, #tpu.memory_space<vmem>>, vector<2x1x128xf32>,
    %cst_39 = arith.constant dense<0.000000e+00> : vector<2x256xf32>
    %96 = tpu.matmul %92, %2, %cst_39 {dimension_numbers = #tpu.dot_dimension_numbers<[1], [0], [0], [1], [0, 0, 1, 1], [], []>} : vector<2x128xf32>, vector<128x256xf32>, vector<2x256xf32> -> vector<2x256xf32>
    %97 = arith.addf %96, %24 : vector<2x256xf32>
    %c0_40 = arith.constant 0 : index
    %c1_41 = arith.constant 1 : index
    %c0_42 = arith.constant 0 : index
    %98 = vector.load %arg11[%c0_40, %c1_41, %c0_42] : memref<2x3x256xf32, #tpu.memory_space<vmem>>, vector<2x1x256xf32>
    %99 = vector.shape_cast %98 : vector<2x1x256xf32> to vector<2x256xf32>
    %100 = vector.shape_cast %97 : vector<2x256xf32> to vector<2x1x256xf32>
    tpu.vector_store %arg11[%c0_40, %c1_41, %c0_42], %100 {strides = array<i32>} : memref<2x3x256xf32, #tpu.memory_space<vmem>>, vector<2x1x256xf32>,
    %101 = vector.extract_strided_slice %17 {offsets = [2, 0], sizes = [1, 512], strides = [1, 1]} : vector<8x512xf32> to vector<1x512xf32>
    %102 = vector.extract_strided_slice %17 {offsets = [6, 0], sizes = [1, 512], strides = [1, 1]} : vector<8x512xf32> to vector<1x512xf32>
    %103 = tpu.concatenate %101, %102 in 0 : vector<1x512xf32>, vector<1x512xf32> -> vector<2x512xf32>
    %cst_43 = arith.constant dense<0.000000e+00> : vector<2x512xf32>
    %104 = tpu.matmul %92, %18, %cst_43 {dimension_numbers = #tpu.dot_dimension_numbers<[1], [0], [0], [1], [0, 0, 1, 1], [], []>} : vector<2x128xf32>, vector<128x512xf32>, vector<2x512xf32> -> vector<2x512xf32>
    %105 = arith.addf %103, %104 : vector<2x512xf32>
    %106 = vector.extract_strided_slice %105 {offsets = [0, 0], sizes = [2, 128], strides = [1, 1]} : vector<2x512xf32> to vector<2x128xf32>
    %107 = arith.negf %106 : vector<2x128xf32>
    %108 = math.exp %107 : vector<2x128xf32>
    %cst_44 = arith.constant 1.000000e+00 : f32
    %109 = vector.broadcast %cst_44 : f32 to vector<2x128xf32>
    %110 = arith.addf %109, %108 : vector<2x128xf32>
    %111 = arith.divf %109, %110 : vector<2x128xf32>
    %112 = vector.extract_strided_slice %105 {offsets = [0, 128], sizes = [2, 128], strides = [1, 1]} : vector<2x512xf32> to vector<2x128xf32>
    %113 = arith.negf %112 : vector<2x128xf32>
    %114 = math.exp %113 : vector<2x128xf32>
    %cst_45 = arith.constant 1.000000e+00 : f32
    %115 = vector.broadcast %cst_45 : f32 to vector<2x128xf32>
    %116 = arith.addf %115, %114 : vector<2x128xf32>
    %117 = arith.divf %115, %116 : vector<2x128xf32>
    %118 = vector.extract_strided_slice %105 {offsets = [0, 256], sizes = [2, 128], strides = [1, 1]} : vector<2x512xf32> to vector<2x128xf32>
    %119 = math.tanh %118 : vector<2x128xf32>
    %120 = vector.extract_strided_slice %105 {offsets = [0, 384], sizes = [2, 128], strides = [1, 1]} : vector<2x512xf32> to vector<2x128xf32>
    %121 = arith.negf %120 : vector<2x128xf32>
    %122 = math.exp %121 : vector<2x128xf32>
    %cst_46 = arith.constant 1.000000e+00 : f32
    %123 = vector.broadcast %cst_46 : f32 to vector<2x128xf32>
    %124 = arith.addf %123, %122 : vector<2x128xf32>
    %125 = arith.divf %123, %124 : vector<2x128xf32>
    %126 = arith.mulf %117, %90 : vector<2x128xf32>
    %127 = arith.mulf %111, %119 : vector<2x128xf32>
    %128 = arith.addf %126, %127 : vector<2x128xf32>
    %129 = math.tanh %128 : vector<2x128xf32>
    %130 = arith.mulf %125, %129 : vector<2x128xf32>
    %c0_47 = arith.constant 0 : index
    %c2 = arith.constant 2 : index
    %c0_48 = arith.constant 0 : index
    %131 = vector.load %arg10[%c0_47, %c2, %c0_48] : memref<2x3x128xf32, #tpu.memory_space<vmem>>, vector<2x1x128xf32>
    %132 = vector.shape_cast %131 : vector<2x1x128xf32> to vector<2x128xf32>
    %133 = vector.shape_cast %130 : vector<2x128xf32> to vector<2x1x128xf32>
    tpu.vector_store %arg10[%c0_47, %c2, %c0_48], %133 {strides = array<i32>} : memref<2x3x128xf32, #tpu.memory_space<vmem>>, vector<2x1x128xf32>,
    %cst_49 = arith.constant dense<0.000000e+00> : vector<2x256xf32>
    %134 = tpu.matmul %130, %2, %cst_49 {dimension_numbers = #tpu.dot_dimension_numbers<[1], [0], [0], [1], [0, 0, 1, 1], [], []>} : vector<2x128xf32>, vector<128x256xf32>, vector<2x256xf32> -> vector<2x256xf32>
    %135 = arith.addf %134, %24 : vector<2x256xf32>
    %c0_50 = arith.constant 0 : index
    %c2_51 = arith.constant 2 : index
    %c0_52 = arith.constant 0 : index
    %136 = vector.load %arg11[%c0_50, %c2_51, %c0_52] : memref<2x3x256xf32, #tpu.memory_space<vmem>>, vector<2x1x256xf32>
    %137 = vector.shape_cast %136 : vector<2x1x256xf32> to vector<2x256xf32>
    %138 = vector.shape_cast %135 : vector<2x256xf32> to vector<2x1x256xf32>
    tpu.vector_store %arg11[%c0_50, %c2_51, %c0_52], %138 {strides = array<i32>} : memref<2x3x256xf32, #tpu.memory_space<vmem>>, vector<2x1x256xf32>,
    return
  }
}

</mosaic_0001>

<bundles_post_ra>
// kernel: simple_latent_prediction_forward.1
= control target key start
LH: loop header
LB: loop body
LE: loop exit
PB: predicated region body
PF: predicated region fallthrough
CT: control target
= control target key end

     0   :  { %s3154_s0 = inlined_call_operand.vmem [shape: f32[8,256], index: 0, kind: input, shape index: {}]   ;;  %s3155_s1 = inlined_call_operand.vmem [shape: f32[256,128], index: 1, kind: input, shape index: {}]   ;;  %s3156_s2 = inlined_call_operand.vmem [shape: f32[1,128], index: 2, kind: input, shape index: {}]   ;;  %s3157_s3 = inlined_call_operand.vmem [shape: f32[128,256], index: 3, kind: input, shape index: {}]   ;;  %s3158_s4 = inlined_call_operand.vmem [shape: f32[1,256], index: 4, kind: input, shape index: {}]   ;;  %s3159_s5 = inlined_call_operand.vmem [shape: f32[128,512], index: 5, kind: input, shape index: {}]   ;;  %s3160_s6 = inlined_call_operand.vmem [shape: f32[128,512], index: 6, kind: input, shape index: {}]   ;;  %s3161_s7 = inlined_call_operand.vmem [shape: f32[1,512], index: 7, kind: input, shape index: {}]   ;;  %s3162_s8 = inlined_call_operand.hbm [shape: f32[8,128], index: 8, kind: output, shape index: {0}]   ;;  %s3163_s9 = inlined_call_operand.vmem [shape: f32[8,256], index: 9, kind: output, shape index: {1}]   ;;  %s3164_s10 = inlined_call_operand.vmem [shape: f32[2,3,128], index: 10, kind: output, shape index: {2}]   ;;  %s3165_s11 = inlined_call_operand.vmem [shape: f32[2,3,256], index: 11, kind: output, shape index: {3}]  }
   0x1   :  { %v67_v0 = vld [vmem:[%s3155_s1 + $0xf8] sm:$0xff]  ;;  %v66_v2 = vld [vmem:[%s3155_s1 + $0xf0] sm:$0xff]  ;;  %v65_v4 = vld [vmem:[%s3155_s1 + $0xe8] sm:$0xff] }
   0x2   :  { %v51_v1 = vld [vmem:[%s3155_s1 + $0x78] sm:$0xff]  ;;  %1563 = vmatprep.subr.mxu0 %v67_v0  ;;  %v50_v3 = vld [vmem:[%s3155_s1 + $0x70] sm:$0xff]  ;;  %v49_v5 = vld [vmem:[%s3155_s1 + $0x68] sm:$0xff] }
   0x3   :  { %1564 = vmatpush3.msra.mxu0 %v51_v1  ;;  %v64_v6 = vld [vmem:[%s3155_s1 + $0xe0] sm:$0xff]  ;;  %v63_v8 = vld [vmem:[%s3155_s1 + $0xd8] sm:$0xff]  ;;  %v62_v10 = vld [vmem:[%s3155_s1 + $0xd0] sm:$0xff] }
   0x4   :  { %1565 = vmatprep.subr.mxu0 %v66_v2  ;;  %v48_v7 = vld [vmem:[%s3155_s1 + $0x60] sm:$0xff]  ;;  %v47_v9 = vld [vmem:[%s3155_s1 + $0x58] sm:$0xff]  ;;  %v46_v11 = vld [vmem:[%s3155_s1 + $0x50] sm:$0xff] }
   0x5   :  { %1566 = vmatpush3.msra.mxu0 %v50_v3  ;;  %v61_v12 = vld [vmem:[%s3155_s1 + $0xc8] sm:$0xff]  ;;  %v1814_v15 = vld [vmem:[%s3157_s3 + $0xf8] sm:$0xff]  ;;  %v60_v16 = vld [vmem:[%s3155_s1 + $0xc0] sm:$0xff] }
   0x6   :  { %1567 = vmatprep.subr.mxu0 %v65_v4  ;;  %v35_v13 = vld [vmem:[%s3154_s0 + $0x8] sm:$0xff]  ;;  %190 = vmatprep.subr.mxu1 %v1814_v15  ;;  %v1823_v17 = vld [vmem:[%s3157_s3 + $0xf0] sm:$0xff]  ;;  %v44_v19 = vld [vmem:[%s3155_s1 + $0x40] sm:$0xff] }
   0x7   :  { %1568 = vmatpush3.msra.mxu0 %v49_v5  ;;  %v45_v14 = vld [vmem:[%s3155_s1 + $0x48] sm:$0xff]  ;;  %172 = vmatprep.mubr.f32.mxu0 %v35_v13  ;;  %v1837_v20 = vld [vmem:[%s3157_s3 + $0xe0] sm:$0xff]  ;;  %v59_v21 = vld [vmem:[%s3155_s1 + $0xb8] sm:$0xff] }
   0x8   :  { %1569 = vmatprep.subr.mxu0 %v64_v6  ;;  %v1828_v18 = vld [vmem:[%s3157_s3 + $0xe8] sm:$0xff]  ;;  %191 = vmatpush1.msra.mxu1 %v1823_v17  ;;  %v1846_v22 = vld [vmem:[%s3157_s3 + $0xd8] sm:$0xff]  ;;  %v1851_v23 = vld [vmem:[%s3157_s3 + $0xd0] sm:$0xff] }
   0x9   :  { %1570 = vmatpush3.msra.mxu0 %v48_v7  ;;  %192 = vmatprep.subr.mxu1 %v1828_v18  ;;  %v43_v24 = vld [vmem:[%s3155_s1 + $0x38] sm:$0xff]  ;;  %v1860_v25 = vld [vmem:[%s3157_s3 + $0xc8] sm:$0xff]  ;;  %v58_v26 = vld [vmem:[%s3155_s1 + $0xb0] sm:$0xff] }
   0xa   :  { %1571 = vmatprep.subr.mxu0 %v63_v8  ;;  %193 = vmatpush1.msra.mxu1 %v1837_v20  ;;  %v1869_v27 = vld [vmem:[%s3157_s3 + $0xc0] sm:$0xff]  ;;  %v42_v28 = vld [vmem:[%s3155_s1 + $0x30] sm:$0xff]  ;;  %v1878_v29 = vld [vmem:[%s3157_s3 + $0xb8] sm:$0xff] }
   0xb   :  { %1572 = vmatpush3.msra.mxu0 %v47_v9  ;;  %194 = vmatprep.subr.mxu1 %v1846_v22  ;;  %v57_v30 = vld [vmem:[%s3155_s1 + $0xa8] sm:$0xff]  ;;  %v1887_v31 = vld [vmem:[%s3157_s3 + $0xb0] sm:$0xff]  ;;  %v56_v34 = vld [vmem:[%s3155_s1 + $0xa0] sm:$0xff] }
   0xc   :  { %1573 = vmatprep.subr.mxu0 %v62_v10  ;;  %195 = vmatpush1.msra.mxu1 %v1851_v23  ;;  %v41_v32 = vld [vmem:[%s3155_s1 + $0x28] sm:$0xff]  ;;  %v1905_v35 = vld [vmem:[%s3157_s3 + $0xa0] sm:$0xff]  ;;  %v1914_v37 = vld [vmem:[%s3157_s3 + $0x98] sm:$0xff] }
   0xd   :  { %1574 = vmatpush3.msra.mxu0 %v46_v11  ;;  %196 = vmatprep.subr.mxu1 %v1860_v25  ;;  %v1896_v33 = vld [vmem:[%s3157_s3 + $0xa8] sm:$0xff]  ;;  %v40_v36 = vld [vmem:[%s3155_s1 + $0x20] sm:$0xff]  ;;  %v55_v38 = vld [vmem:[%s3155_s1 + $0x98] sm:$0xff] }
   0xe   :  { %1575 = vmatprep.subr.mxu0 %v61_v12  ;;  %197 = vmatpush1.msra.mxu1 %v1869_v27  ;;  %v1923_v39 = vld [vmem:[%s3157_s3 + $0x90] sm:$0xff]  ;;  %v39_v40 = vld [vmem:[%s3155_s1 + $0x18] sm:$0xff]  ;;  %v1932_v41 = vld [vmem:[%s3157_s3 + $0x88] sm:$0xff] }
   0xf   :  { %1576 = vmatpush3.msra.mxu0 %v45_v14  ;;  %198 = vmatprep.subr.mxu1 %v1878_v29  ;;  %v54_v42 = vld [vmem:[%s3155_s1 + $0x90] sm:$0xff]  ;;  %v1941_v43 = vld [vmem:[%s3157_s3 + $0x80] sm:$0xff]  ;;  %v1950_v45 = vld [vmem:[%s3157_s3 + $0x78] sm:$0xff] }
  0x10   :  { %1577 = vmatprep.subr.mxu0 %v60_v16  ;;  %199 = vmatpush1.msra.mxu1 %v1887_v31  ;;  %v38_v44 = vld [vmem:[%s3155_s1 + $0x10] sm:$0xff]  ;;  %v53_v46 = vld [vmem:[%s3155_s1 + $0x88] sm:$0xff]  ;;  %v52_v50 = vld [vmem:[%s3155_s1 + $0x80] sm:$0xff] }
  0x11   :  { %1578 = vmatpush3.msra.mxu0 %v44_v19  ;;  %200 = vmatprep.subr.mxu1 %v1896_v33  ;;  %v1959_v47 = vld [vmem:[%s3157_s3 + $0x70] sm:$0xff]  ;;  %v37_v48 = vld [vmem:[%s3155_s1 + $0x8] sm:$0xff]  ;;  %v1977_v51 = vld [vmem:[%s3157_s3 + $0x60] sm:$0xff] }
  0x12   :  { %1579 = vmatprep.subr.mxu0 %v59_v21  ;;  %201 = vmatpush1.msra.mxu1 %v1905_v35  ;;  %v1968_v49 = vld [vmem:[%s3157_s3 + $0x68] sm:$0xff] }
  0x13   :  { %1580 = vmatpush3.msra.mxu0 %v43_v24  ;;  %202 = vmatprep.subr.mxu1 %v1914_v37 }
  0x14   :  { %1581 = vmatprep.subr.mxu0 %v58_v26  ;;  %203 = vmatpush1.msra.mxu1 %v1923_v39 }
  0x15   :  { %1582 = vmatpush3.msra.mxu0 %v42_v28  ;;  %204 = vmatprep.subr.mxu1 %v1932_v41 }
  0x16   :  { %1583 = vmatprep.subr.mxu0 %v57_v30  ;;  %205 = vmatpush1.msra.mxu1 %v1941_v43 }
  0x17   :  { %1584 = vmatpush3.msra.mxu0 %v41_v32  ;;  %206 = vmatprep.subr.mxu1 %v1950_v45 }
  0x18   :  { %1585 = vmatprep.subr.mxu0 %v56_v34 }
  0x19   :  { %1586 = vmatpush3.msra.mxu0 %v40_v36 }
  0x1a   :  { %1587 = vmatprep.subr.mxu0 %v55_v38 }
  0x1b   :  { %1588 = vmatpush3.msra.mxu0 %v39_v40 }
  0x1c   :  { %1589 = vmatprep.subr.mxu0 %v54_v42 }
  0x1d   :  { %1590 = vmatpush3.msra.mxu0 %v38_v44 }
  0x1e   :  { %17 = vsyncpa [#allocation3], 0  ;;  %1591 = vmatprep.subr.mxu0 %v53_v46  ;;  %v36_v52 = vld [vmem:[%s3155_s1] sm:$0xff]  ;;  %207 = vmatpush1.msra.mxu1 %v1959_v47  ;;  %v1986_v53 = vld [vmem:[%s3157_s3 + $0x58] sm:$0xff]  ;;  %vm558_vm0 = vcmask 1040384   ;;  %s1705_s14 = smov [#allocation2]  }
  0x1f   :  { %1592 = vmatpush3.msra.mxu0 %v37_v48  ;;  %v34_v54 = vld [vmem:[%s3154_s0] sm:$0xff]  ;;  %v324_v55 = vld [vmem:[%s3159_s5 + $0x1e8] sm:$0xff]  ;;  %208 = vmatprep.subr.mxu1 %v1968_v49  ;;  %v2002_v57 = vld [vmem:[%s3157_s3 + $0x50] sm:$0xff] }
  0x20   :  { %1593 = vmatprep.subr.mxu0 %v52_v50  ;;  %v323_v56 = vld [vmem:[%s3159_s5 + $0x1e0] sm:$0xff]  ;;  %209 = vmatpush1.msra.mxu1 %v1977_v51  ;;  %v320_v58 = vld [vmem:[%s3159_s5 + $0x1c8] sm:$0xff]  ;;  %v2028_v63 = vld [vmem:[%s3157_s3 + $0x38] sm:$0xff] }
  0x21   :  { %1594 = vmatpush3.msra.mxu0 %v36_v52  ;;  %210 = vmatprep.subr.mxu1 %v1986_v53  ;;  %v2011_v59 = vld [vmem:[%s3157_s3 + $0x48] sm:$0xff]  ;;  %v319_v60 = vld [vmem:[%s3159_s5 + $0x1c0] sm:$0xff]  ;;  %v2037_v1 = vld [vmem:[%s3157_s3 + $0x30] sm:$0xff] }
  0x22   :  { %173 = vmatmul.mubr.f32.vlgmr.msra.gmra.mxu0 %v34_v54  ;;  %349 = vmatprep.subr.mxu0 %v324_v55  ;;  %v2019_v61 = vld [vmem:[%s3157_s3 + $0x40] sm:$0xff]  ;;  %v316_v62 = vld [vmem:[%s3159_s5 + $0x1a8] sm:$0xff]  ;;  %v2123_v40 = vld [vmem:[%s3157_s3 + $0x18] sm:$0xff] }
  0x23   :  { %350 = vmatpush1.msra.mxu0 %v323_v56  ;;  %211 = vmatpush1.msra.mxu1 %v2002_v57  ;;  %v315_v0 = vld [vmem:[%s3159_s5 + $0x1a0] sm:$0xff]  ;;  %v312_v2 = vld [vmem:[%s3159_s5 + $0x188] sm:$0xff]  ;;  %v2132_v44 = vld [vmem:[%s3157_s3 + $0x10] sm:$0xff] }
  0x24   :  { %351 = vmatprep.subr.mxu0 %v320_v58  ;;  %212 = vmatprep.subr.mxu1 %v2011_v59  ;;  %v311_v3 = vld [vmem:[%s3159_s5 + $0x180] sm:$0xff]  ;;  %v308_v4 = vld [vmem:[%s3159_s5 + $0x168] sm:$0xff]  ;;  %v326_v55 = vld [vmem:[%s3159_s5 + $0x1f8] sm:$0xff]  ;;  %v3166_v58 = vmov 0.0  }
  0x25   :  { %352 = vmatpush1.msra.mxu0 %v319_v60  ;;  %213 = vmatpush1.msra.mxu1 %v2019_v61  ;;  %v307_v5 = vld [vmem:[%s3159_s5 + $0x160] sm:$0xff]  ;;  %v304_v6 = vld [vmem:[%s3159_s5 + $0x148] sm:$0xff] }
  0x26   :  { %353 = vmatprep.subr.mxu0 %v316_v62  ;;  %214 = vmatprep.subr.mxu1 %v2028_v63  ;;  %v303_v7 = vld [vmem:[%s3159_s5 + $0x140] sm:$0xff]  ;;  %v300_v8 = vld [vmem:[%s3159_s5 + $0x128] sm:$0xff] }
  0x27   :  { %354 = vmatpush1.msra.mxu0 %v315_v0  ;;  %215 = vmatpush1.msra.mxu1 %v2037_v1  ;;  %v299_v9 = vld [vmem:[%s3159_s5 + $0x120] sm:$0xff]  ;;  %v296_v10 = vld [vmem:[%s3159_s5 + $0x108] sm:$0xff] }
  0x28   :  { %355 = vmatprep.subr.mxu0 %v312_v2  ;;  %v295_v11 = vld [vmem:[%s3159_s5 + $0x100] sm:$0xff]  ;;  %v292_v12 = vld [vmem:[%s3159_s5 + $0xe8] sm:$0xff]  ;;  %254 = vmatprep.mubr.f32.mxu1 %v3166_v58 }
  0x29   :  { %356 = vmatpush1.msra.mxu0 %v311_v3  ;;  %v291_v13 = vld [vmem:[%s3159_s5 + $0xe0] sm:$0xff]  ;;  %v288_v14 = vld [vmem:[%s3159_s5 + $0xc8] sm:$0xff]  ;;  %413 = vmatprep.mubr.f32.mxu0 %v3166_v58  ;;  %v274_v58 = vld [vmem:[%s3159_s5 + $0x58] sm:$0xff] }
  0x2a   :  { %357 = vmatprep.subr.mxu0 %v308_v4  ;;  %v287_v16 = vld [vmem:[%s3159_s5 + $0xc0] sm:$0xff]  ;;  %v284_v19 = vld [vmem:[%s3159_s5 + $0xa8] sm:$0xff]  ;;  %v325_v4 = vld [vmem:[%s3159_s5 + $0x1f0] sm:$0xff] }
  0x2b   :  { %358 = vmatpush1.msra.mxu0 %v307_v5  ;;  %v283_v21 = vld [vmem:[%s3159_s5 + $0xa0] sm:$0xff]  ;;  %v280_v24 = vld [vmem:[%s3159_s5 + $0x88] sm:$0xff] }
  0x2c   :  { %359 = vmatprep.subr.mxu0 %v304_v6  ;;  %v279_v26 = vld [vmem:[%s3159_s5 + $0x80] sm:$0xff]  ;;  %v276_v28 = vld [vmem:[%s3159_s5 + $0x68] sm:$0xff]  ;;  %v322_v6 = vld [vmem:[%s3159_s5 + $0x1d8] sm:$0xff] }
  0x2d   :  { %360 = vmatpush1.msra.mxu0 %v303_v7  ;;  %v275_v30 = vld [vmem:[%s3159_s5 + $0x60] sm:$0xff]  ;;  %v2105_v32 = vld [vmem:[%s3157_s3 + $0x28] sm:$0xff] }
  0x2e   :  { %361 = vmatprep.subr.mxu0 %v300_v8  ;;  %v272_v34 = vld [vmem:[%s3159_s5 + $0x48] sm:$0xff]  ;;  %216 = vmatprep.subr.mxu1 %v2105_v32  ;;  %v2114_v36 = vld [vmem:[%s3157_s3 + $0x20] sm:$0xff]  ;;  %v321_v8 = vld [vmem:[%s3159_s5 + $0x1d0] sm:$0xff] }
  0x2f   :  { %362 = vmatpush1.msra.mxu0 %v299_v9  ;;  %v271_v38 = vld [vmem:[%s3159_s5 + $0x40] sm:$0xff]  ;;  %217 = vmatpush1.msra.mxu1 %v2114_v36  ;;  %v268_v42 = vld [vmem:[%s3159_s5 + $0x28] sm:$0xff] }
  0x30   :  { %363 = vmatprep.subr.mxu0 %v296_v10  ;;  %218 = vmatprep.subr.mxu1 %v2123_v40  ;;  %v267_v46 = vld [vmem:[%s3159_s5 + $0x20] sm:$0xff]  ;;  %v2141_v48 = vld [vmem:[%s3157_s3 + $0x8] sm:$0xff]  ;;  %v318_v10 = vld [vmem:[%s3159_s5 + $0x1b8] sm:$0xff] }
  0x31   :  { %364 = vmatpush1.msra.mxu0 %v295_v11  ;;  %219 = vmatpush1.msra.mxu1 %v2132_v44  ;;  %v264_v50 = vld [vmem:[%s3159_s5 + $0x8] sm:$0xff]  ;;  %v2150_v52 = vld [vmem:[%s3157_s3] sm:$0xff] }
  0x32   :  { %365 = vmatprep.subr.mxu0 %v292_v12  ;;  %220 = vmatprep.subr.mxu1 %v2141_v48  ;;  %v263_v54 = vld [vmem:[%s3159_s5] sm:$0xff]  ;;  %v2162_v56 = vld [vmem:[%s3160_s6 + $0x1e8] sm:$0xff]  ;;  %v317_v12 = vld [vmem:[%s3159_s5 + $0x1b0] sm:$0xff] }
  0x33   :  { %366 = vmatpush1.msra.mxu0 %v291_v13  ;;  %221 = vmatpush1.msra.mxu1 %v2150_v52  ;;  %v1542_v62 = vld [vmem:[%s3156_s2] ss:$0 sm:$0xff]  ;;  %v2186_v7 = vld [vmem:[%s3160_s6 + $0x1c8] sm:$0xff] }
  0x34   :  { %367 = vmatprep.subr.mxu0 %v288_v14  ;;  %420 = vmatprep.subr.mxu1 %v326_v55  ;;  %v2178_v5 = vld [vmem:[%s3160_s6 + $0x1e0] sm:$0xff]  ;;  %v2206_v11 = vld [vmem:[%s3160_s6 + $0x1a8] sm:$0xff]  ;;  %v314_v14 = vld [vmem:[%s3159_s5 + $0x198] sm:$0xff] }
  0x35   :  { %368 = vmatpush1.msra.mxu0 %v287_v16  ;;  %v2197_v9 = vld [vmem:[%s3160_s6 + $0x1c0] sm:$0xff]  ;;  %v2224_v16 = vld [vmem:[%s3160_s6 + $0x188] sm:$0xff]  ;;  %v301_v55 = vld [vmem:[%s3159_s5 + $0x130] sm:$0xff] }
  0x36   :  { %369 = vmatprep.subr.mxu0 %v284_v19  ;;  %v2215_v13 = vld [vmem:[%s3160_s6 + $0x1a0] sm:$0xff]  ;;  %3249 = vst [vmem:[#allocation6_spill] sm:$0xff] %v2224_v16  ;;  %v313_v19 = vld [vmem:[%s3159_s5 + $0x190] sm:$0xff] }
  0x37   :  { %370 = vmatpush1.msra.mxu0 %v283_v21  ;;  %3248 = vst [vmem:[#allocation5_spill] sm:$0xff] %v2215_v13  ;;  %v2233_v21 = vld [vmem:[%s3160_s6 + $0x180] sm:$0xff] }
  0x38   :  { %371 = vmatprep.subr.mxu0 %v280_v24  ;;  %3250 = vst [vmem:[#allocation7_spill] sm:$0xff] %v2233_v21  ;;  %v310_v24 = vld [vmem:[%s3159_s5 + $0x178] sm:$0xff] }
  0x39   :  { %372 = vmatpush1.msra.mxu0 %v279_v26  ;;  %v2242_v26 = vld [vmem:[%s3160_s6 + $0x168] sm:$0xff] }
  0x3a   :  { %373 = vmatprep.subr.mxu0 %v276_v28  ;;  %3251 = vst [vmem:[#allocation8_spill] sm:$0xff] %v2242_v26  ;;  %v309_v28 = vld [vmem:[%s3159_s5 + $0x170] sm:$0xff] }
  0x3b   :  { %374 = vmatpush1.msra.mxu0 %v275_v30  ;;  %v2251_v30 = vld [vmem:[%s3160_s6 + $0x160] sm:$0xff] }
  0x3c   :  { %375 = vmatprep.subr.mxu0 %v272_v34  ;;  %3252 = vst [vmem:[#allocation9_spill] sm:$0xff] %v2251_v30  ;;  %v306_v34 = vld [vmem:[%s3159_s5 + $0x158] sm:$0xff] }
  0x3d   :  { %376 = vmatpush1.msra.mxu0 %v271_v38  ;;  %v2260_v38 = vld [vmem:[%s3160_s6 + $0x148] sm:$0xff] }
  0x3e   :  { %377 = vmatprep.subr.mxu0 %v268_v42  ;;  %3253 = vst [vmem:[#allocation10_spill] sm:$0xff] %v2260_v38  ;;  %v305_v42 = vld [vmem:[%s3159_s5 + $0x150] sm:$0xff] }
  0x3f   :  { %378 = vmatpush1.msra.mxu0 %v267_v46  ;;  %v2269_v46 = vld [vmem:[%s3160_s6 + $0x140] sm:$0xff] }
  0x40   :  { %379 = vmatprep.subr.mxu0 %v264_v50  ;;  %3254 = vst [vmem:[#allocation11_spill] sm:$0xff] %v2269_v46  ;;  %v302_v50 = vld [vmem:[%s3159_s5 + $0x138] sm:$0xff] }
  0x41   :  { %380 = vmatpush1.msra.mxu0 %v263_v54  ;;  %v2278_v54 = vld [vmem:[%s3160_s6 + $0x128] sm:$0xff] }
  0x42   :  { %576 = vmatprep.subr.mxu0 %v2162_v56  ;;  %3255 = vst [vmem:[#allocation12_spill] sm:$0xff] %v2278_v54 }
  0xe2   :  { %v1595_v60 = vpop.f32.mrf.mxu0 }
  0xe4   :  { %v1596_v0 = vpop.f32.mrf.mxu0 }
  0xe5   :  { %v1597_v2 = vadd.f32 %v1596_v0, %v1595_v60  ;;  %v2287_v60 = vld [vmem:[%s3160_s6 + $0x120] sm:$0xff]  ;;  %v2296_v0 = vld [vmem:[%s3160_s6 + $0x108] sm:$0xff] }
  0xe6   :  { %3256 = vst [vmem:[#allocation13_spill] sm:$0xff] %v2287_v60  ;;  %3257 = vst [vmem:[#allocation14_spill] sm:$0xff] %v2296_v0 }
  0xe7   :  { %v2170_v3 = vadd.f32 %v1597_v2, %v1542_v62  ;;  %v298_v62 = vld [vmem:[%s3159_s5 + $0x118] sm:$0xff]  ;;  %v297_v2 = vld [vmem:[%s3159_s5 + $0x110] sm:$0xff] }
  0xe9   :  { %178 = vst [vmem:[#allocation2] sm:$0xff] %v2170_v3  ;;  %255 = vmatmul.mubr.f32.vlgmr.msra.gmra.mxu1 %v2170_v3  ;;  %414 = vmatmul.mubr.f32.vlgmr.msra.gmra.mxu0 %v2170_v3 }
  0xea   :  { %421 = vmatpush1.msra.mxu1 %v325_v4  ;;  %577 = vmatpush1.msra.mxu0 %v2178_v5  ;;  %v2305_v4 = vld [vmem:[%s3160_s6 + $0x100] sm:$0xff] }
  0xeb   :  { %422 = vmatprep.subr.mxu1 %v322_v6  ;;  %578 = vmatprep.subr.mxu0 %v2186_v7  ;;  %3258 = vst [vmem:[#allocation15_spill] sm:$0xff] %v2305_v4  ;;  %v294_v6 = vld [vmem:[%s3159_s5 + $0xf8] sm:$0xff] }
  0xec   :  { %423 = vmatpush1.msra.mxu1 %v321_v8  ;;  %579 = vmatpush1.msra.mxu0 %v2197_v9  ;;  %v2314_v8 = vld [vmem:[%s3160_s6 + $0xe8] sm:$0xff] }
  0xed   :  { %424 = vmatprep.subr.mxu1 %v318_v10  ;;  %580 = vmatprep.subr.mxu0 %v2206_v11  ;;  %3259 = vst [vmem:[#allocation16_spill] sm:$0xff] %v2314_v8  ;;  %v293_v10 = vld [vmem:[%s3159_s5 + $0xf0] sm:$0xff] }
  0xee   :  { %425 = vmatpush1.msra.mxu1 %v317_v12  ;;  %581 = vmatpush1.msra.mxu0 %v2215_v13  ;;  %v2323_v12 = vld [vmem:[%s3160_s6 + $0xe0] sm:$0xff] }
  0xef   :  { %426 = vmatprep.subr.mxu1 %v314_v14  ;;  %582 = vmatprep.subr.mxu0 %v2224_v16  ;;  %3260 = vst [vmem:[#allocation17_spill] sm:$0xff] %v2323_v12  ;;  %v290_v14 = vld [vmem:[%s3159_s5 + $0xd8] sm:$0xff] }
  0xf0   :  { %427 = vmatpush1.msra.mxu1 %v313_v19  ;;  %583 = vmatpush1.msra.mxu0 %v2233_v21  ;;  %v2332_v19 = vld [vmem:[%s3160_s6 + $0xc8] sm:$0xff] }
  0xf1   :  { %428 = vmatprep.subr.mxu1 %v310_v24  ;;  %584 = vmatprep.subr.mxu0 %v2242_v26  ;;  %3261 = vst [vmem:[#allocation18_spill] sm:$0xff] %v2332_v19  ;;  %v289_v24 = vld [vmem:[%s3159_s5 + $0xd0] sm:$0xff] }
  0xf2   :  { %429 = vmatpush1.msra.mxu1 %v309_v28  ;;  %585 = vmatpush1.msra.mxu0 %v2251_v30  ;;  %v2341_v28 = vld [vmem:[%s3160_s6 + $0xc0] sm:$0xff] }
  0xf3   :  { %430 = vmatprep.subr.mxu1 %v306_v34  ;;  %586 = vmatprep.subr.mxu0 %v2260_v38  ;;  %3262 = vst [vmem:[#allocation19_spill] sm:$0xff] %v2341_v28  ;;  %v286_v34 = vld [vmem:[%s3159_s5 + $0xb8] sm:$0xff] }
  0xf4   :  { %431 = vmatpush1.msra.mxu1 %v305_v42  ;;  %587 = vmatpush1.msra.mxu0 %v2269_v46  ;;  %v2350_v42 = vld [vmem:[%s3160_s6 + $0xa8] sm:$0xff] }
  0xf5   :  { %432 = vmatprep.subr.mxu1 %v302_v50  ;;  %588 = vmatprep.subr.mxu0 %v2278_v54  ;;  %3263 = vst [vmem:[#allocation20_spill] sm:$0xff] %v2350_v42  ;;  %v285_v50 = vld [vmem:[%s3159_s5 + $0xb0] sm:$0xff] }
  0xf6   :  { %433 = vmatpush1.msra.mxu1 %v301_v55  ;;  %589 = vmatpush1.msra.mxu0 %v2287_v60  ;;  %v2359_v55 = vld [vmem:[%s3160_s6 + $0xa0] sm:$0xff] }
  0xf7   :  { %434 = vmatprep.subr.mxu1 %v298_v62  ;;  %590 = vmatprep.subr.mxu0 %v2296_v0  ;;  %3264 = vst [vmem:[#allocation21_spill] sm:$0xff] %v2359_v55  ;;  %v282_v62 = vld [vmem:[%s3159_s5 + $0x98] sm:$0xff] }
  0xf8   :  { %435 = vmatpush1.msra.mxu1 %v297_v2  ;;  %591 = vmatpush1.msra.mxu0 %v2305_v4  ;;  %v2368_v2 = vld [vmem:[%s3160_s6 + $0x88] sm:$0xff] }
  0xf9   :  { %436 = vmatprep.subr.mxu1 %v294_v6  ;;  %592 = vmatprep.subr.mxu0 %v2314_v8  ;;  %3265 = vst [vmem:[#allocation22_spill] sm:$0xff] %v2368_v2  ;;  %v281_v6 = vld [vmem:[%s3159_s5 + $0x90] sm:$0xff] }
  0xfa   :  { %437 = vmatpush1.msra.mxu1 %v293_v10  ;;  %593 = vmatpush1.msra.mxu0 %v2323_v12  ;;  %v2377_v10 = vld [vmem:[%s3160_s6 + $0x80] sm:$0xff] }
  0xfb   :  { %438 = vmatprep.subr.mxu1 %v290_v14  ;;  %594 = vmatprep.subr.mxu0 %v2332_v19  ;;  %3266 = vst [vmem:[#allocation23_spill] sm:$0xff] %v2377_v10  ;;  %v278_v14 = vld [vmem:[%s3159_s5 + $0x78] sm:$0xff] }
  0xfc   :  { %439 = vmatpush1.msra.mxu1 %v289_v24  ;;  %595 = vmatpush1.msra.mxu0 %v2341_v28  ;;  %v2386_v24 = vld [vmem:[%s3160_s6 + $0x68] sm:$0xff] }
  0xfd   :  { %440 = vmatprep.subr.mxu1 %v286_v34  ;;  %596 = vmatprep.subr.mxu0 %v2350_v42  ;;  %3267 = vst [vmem:[#allocation24_spill] sm:$0xff] %v2386_v24  ;;  %v277_v34 = vld [vmem:[%s3159_s5 + $0x70] sm:$0xff] }
  0xfe   :  { %441 = vmatpush1.msra.mxu1 %v285_v50  ;;  %597 = vmatpush1.msra.mxu0 %v2359_v55  ;;  %v2395_v50 = vld [vmem:[%s3160_s6 + $0x60] sm:$0xff] }
  0xff   :  { %442 = vmatprep.subr.mxu1 %v282_v62  ;;  %598 = vmatprep.subr.mxu0 %v2368_v2  ;;  %3268 = vst [vmem:[#allocation25_spill] sm:$0xff] %v2395_v50  ;;  %v2404_v62 = vld [vmem:[%s3160_s6 + $0x48] sm:$0xff]  ;;  %v273_v2 = vld [vmem:[%s3159_s5 + $0x50] sm:$0xff] }
 0x100   :  { %443 = vmatpush1.msra.mxu1 %v281_v6  ;;  %599 = vmatpush1.msra.mxu0 %v2377_v10  ;;  %3269 = vst [vmem:[#allocation26_spill] sm:$0xff] %v2404_v62  ;;  %v2413_v6 = vld [vmem:[%s3160_s6 + $0x40] sm:$0xff]  ;;  %v270_v10 = vld [vmem:[%s3159_s5 + $0x38] sm:$0xff] }
 0x101   :  { %444 = vmatprep.subr.mxu1 %v278_v14  ;;  %600 = vmatprep.subr.mxu0 %v2386_v24  ;;  %3270 = vst [vmem:[#allocation27_spill] sm:$0xff] %v2413_v6  ;;  %v2422_v14 = vld [vmem:[%s3160_s6 + $0x28] sm:$0xff]  ;;  %v269_v24 = vld [vmem:[%s3159_s5 + $0x30] sm:$0xff] }
 0x102   :  { %445 = vmatpush1.msra.mxu1 %v277_v34  ;;  %601 = vmatpush1.msra.mxu0 %v2395_v50  ;;  %3271 = vst [vmem:[#allocation28_spill] sm:$0xff] %v2422_v14  ;;  %v2431_v34 = vld [vmem:[%s3160_s6 + $0x20] sm:$0xff]  ;;  %v266_v50 = vld [vmem:[%s3159_s5 + $0x18] sm:$0xff] }
 0x103   :  { %446 = vmatprep.subr.mxu1 %v274_v58  ;;  %602 = vmatprep.subr.mxu0 %v2404_v62  ;;  %3272 = vst [vmem:[#allocation29_spill] sm:$0xff] %v2431_v34  ;;  %v2440_v58 = vld [vmem:[%s3160_s6 + $0x8] sm:$0xff]  ;;  %v265_v62 = vld [vmem:[%s3159_s5 + $0x10] sm:$0xff]  ;;  %s1522_s5 = sshll.u32 %s1705_s14, 4  ;;  %s1523_s5 = int_to_ptr.vmem [resolvable:$true] %s1522_s5 }
 0x104   :  { %447 = vmatpush1.msra.mxu1 %v273_v2  ;;  %603 = vmatpush1.msra.mxu0 %v2413_v6  ;;  %3273 = vst [vmem:[#allocation30_spill] sm:$0xff] %v2440_v58  ;;  %v556_v2 = vrot.slane %v2170_v3, 3  ;;  %v2451_v6 = vld [vmem:[%s3160_s6] sm:$0xff]  ;;  %s1681_s1 = scalar_lea.vmem %s1523_s5, 128  ;;  %p1686_p1 = scmp.lt.s32.totalorder %s1523_s5, %s1523_s5 }
 0x105   :  { %448 = vmatprep.subr.mxu1 %v270_v10  ;;  %604 = vmatprep.subr.mxu0 %v2422_v14  ;;  %3274 = vst [vmem:[#allocation31_spill] sm:$0xff] %v2451_v6  ;;  %v3275_v10 = vmov 0.0   ;;  %v2458_v14 = vld [vmem:[%s3160_s6 + $0x1f8] sm:$0xff]  ;;  %p1682_p0 = scmp.ne.s32.totalorder %s1523_s5, %s1681_s1  ;;  %p1687_p2 = scmp.lt.s32.totalorder %s1681_s1, %s1681_s1 }
 0x106   :  { %449 = vmatpush1.msra.mxu1 %v269_v24  ;;  %605 = vmatpush1.msra.mxu0 %v2431_v34  ;;  %v2464_v24 = vsel %vm558_vm0, %v2170_v3, %v556_v2  ;;  %v2482_v2 = vld [vmem:[%s3160_s6 + $0x1d0] sm:$0xff] }
 0x107   :  { %450 = vmatprep.subr.mxu1 %v266_v50  ;;  %606 = vmatprep.subr.mxu0 %v2440_v58  ;;  %v2469_v50 = vld [vmem:[%s3160_s6 + $0x1f0] sm:$0xff]  ;;  %p1688_p3 = por %p1687_p2, %p1686_p1 }
 0x108   :  { %451 = vmatpush1.msra.mxu1 %v265_v62  ;;  %484 = vmatprep.mubr.f32.mxu1 %v3275_v10  ;;  %3276 = vst [vmem:[#allocation32_spill] sm:$0xff] %v2469_v50  ;;  %v2476_v62 = vld [vmem:[%s3160_s6 + $0x1d8] sm:$0xff] }
 0x109   :  { %607 = vmatpush1.msra.mxu0 %v2451_v6  ;;  %640 = vmatprep.mubr.f32.mxu0 %v3275_v10  ;;  %3277 = vst [vmem:[#allocation33_spill] sm:$0xff] %v2476_v62  ;;  %v2496_v6 = vld [vmem:[%s3160_s6 + $0x1b0] sm:$0xff]  ;;  %p1689_p4 = pnand %p1688_p3, %p1682_p0 }
 0x10a   :  { %485 = vmatmul.mubr.f32.vlgmr.msra.gmra.mxu1 %v2170_v3  ;;  %641 = vmatmul.mubr.f32.vlgmr.msra.gmra.mxu0 %v2464_v24  ;;  %v2489_v3 = vld [vmem:[%s3160_s6 + $0x1b8] sm:$0xff] }
 0x10b   :  { %647 = vmatprep.subr.mxu1 %v2458_v14  ;;  %711 = vmatprep.mubr.f32.mxu1 %v3275_v10 }
 0x10c   :  { %648 = vmatpush1.msra.mxu1 %v2469_v50  ;;  %773 = vmatprep.subr.mxu0 %v1814_v15  ;;  %v2503_v50 = vld [vmem:[%s3160_s6 + $0x198] sm:$0xff] }
 0x10d   :  { %649 = vmatprep.subr.mxu1 %v2476_v62  ;;  %774 = vmatpush1.msra.mxu0 %v1823_v17  ;;  %v2510_v62 = vld [vmem:[%s3160_s6 + $0x190] sm:$0xff]  ;;  %v2517_v17 = vld [vmem:[%s3160_s6 + $0x178] sm:$0xff] }
 0x10e   :  { %650 = vmatpush1.msra.mxu1 %v2482_v2  ;;  %775 = vmatprep.subr.mxu0 %v1828_v18  ;;  %v2524_v18 = vld [vmem:[%s3160_s6 + $0x170] sm:$0xff] }
 0x10f   :  { %651 = vmatprep.subr.mxu1 %v2489_v3  ;;  %776 = vmatpush1.msra.mxu0 %v1837_v20  ;;  %v2531_v20 = vld [vmem:[%s3160_s6 + $0x158] sm:$0xff] }
 0x110   :  { %652 = vmatpush1.msra.mxu1 %v2496_v6  ;;  %777 = vmatprep.subr.mxu0 %v1846_v22  ;;  %v2538_v22 = vld [vmem:[%s3160_s6 + $0x150] sm:$0xff] }
 0x111   :  { %653 = vmatprep.subr.mxu1 %v2503_v50  ;;  %778 = vmatpush1.msra.mxu0 %v1851_v23  ;;  %v2545_v23 = vld [vmem:[%s3160_s6 + $0x138] sm:$0xff] }
 0x112   :  { %654 = vmatpush1.msra.mxu1 %v2510_v62  ;;  %779 = vmatprep.subr.mxu0 %v1860_v25  ;;  %v2552_v25 = vld [vmem:[%s3160_s6 + $0x130] sm:$0xff] }
 0x113   :  { %655 = vmatprep.subr.mxu1 %v2517_v17  ;;  %780 = vmatpush1.msra.mxu0 %v1869_v27  ;;  %3278 = vst [vmem:[#allocation34_spill] sm:$0xff] %v2552_v25  ;;  %v2559_v27 = vld [vmem:[%s3160_s6 + $0x118] sm:$0xff] }
 0x114   :  { %656 = vmatpush1.msra.mxu1 %v2524_v18  ;;  %781 = vmatprep.subr.mxu0 %v1878_v29  ;;  %v2566_v29 = vld [vmem:[%s3160_s6 + $0x110] sm:$0xff] }
 0x115   :  { %657 = vmatprep.subr.mxu1 %v2531_v20  ;;  %782 = vmatpush1.msra.mxu0 %v1887_v31  ;;  %3279 = vst [vmem:[#allocation35_spill] sm:$0xff] %v2566_v29  ;;  %v2573_v31 = vld [vmem:[%s3160_s6 + $0xf8] sm:$0xff] }
 0x116   :  { %658 = vmatpush1.msra.mxu1 %v2538_v22  ;;  %783 = vmatprep.subr.mxu0 %v1896_v33  ;;  %3280 = vst [vmem:[#allocation36_spill] sm:$0xff] %v2573_v31  ;;  %v2580_v33 = vld [vmem:[%s3160_s6 + $0xf0] sm:$0xff] }
 0x117   :  { %659 = vmatprep.subr.mxu1 %v2545_v23  ;;  %784 = vmatpush1.msra.mxu0 %v1905_v35  ;;  %3281 = vst [vmem:[#allocation37_spill] sm:$0xff] %v2580_v33  ;;  %v2587_v35 = vld [vmem:[%s3160_s6 + $0xd8] sm:$0xff] }
 0x118   :  { %660 = vmatpush1.msra.mxu1 %v2552_v25  ;;  %785 = vmatprep.subr.mxu0 %v1914_v37  ;;  %3282 = vst [vmem:[#allocation38_spill] sm:$0xff] %v2587_v35  ;;  %v2594_v37 = vld [vmem:[%s3160_s6 + $0xd0] sm:$0xff] }
 0x119   :  { %661 = vmatprep.subr.mxu1 %v2559_v27  ;;  %786 = vmatpush1.msra.mxu0 %v1923_v39  ;;  %3283 = vst [vmem:[#allocation39_spill] sm:$0xff] %v2594_v37 }
 0x11a   :  { %662 = vmatpush1.msra.mxu1 %v2566_v29  ;;  %787 = vmatprep.subr.mxu0 %v1932_v41  ;;  %v2601_v29 = vld [vmem:[%s3160_s6 + $0xb8] sm:$0xff] }
 0x11b   :  { %663 = vmatprep.subr.mxu1 %v2573_v31  ;;  %788 = vmatpush1.msra.mxu0 %v1941_v43  ;;  %3284 = vst [vmem:[#allocation40_spill] sm:$0xff] %v2601_v29  ;;  %v2608_v31 = vld [vmem:[%s3160_s6 + $0xb0] sm:$0xff] }
 0x11c   :  { %664 = vmatpush1.msra.mxu1 %v2580_v33  ;;  %789 = vmatprep.subr.mxu0 %v1950_v45  ;;  %3285 = vst [vmem:[#allocation41_spill] sm:$0xff] %v2608_v31  ;;  %v2615_v33 = vld [vmem:[%s3160_s6 + $0x98] sm:$0xff] }
 0x11d   :  { %665 = vmatprep.subr.mxu1 %v2587_v35  ;;  %790 = vmatpush1.msra.mxu0 %v1959_v47  ;;  %3286 = vst [vmem:[#allocation42_spill] sm:$0xff] %v2615_v33  ;;  %v2622_v35 = vld [vmem:[%s3160_s6 + $0x90] sm:$0xff] }
 0x11e   :  { %666 = vmatpush1.msra.mxu1 %v2594_v37  ;;  %791 = vmatprep.subr.mxu0 %v1968_v49  ;;  %3287 = vst [vmem:[#allocation43_spill] sm:$0xff] %v2622_v35  ;;  %v2629_v37 = vld [vmem:[%s3160_s6 + $0x78] sm:$0xff] }
 0x11f   :  { %667 = vmatprep.subr.mxu1 %v2601_v29  ;;  %792 = vmatpush1.msra.mxu0 %v1977_v51  ;;  %3288 = vst [vmem:[#allocation44_spill] sm:$0xff] %v2629_v37  ;;  %v2636_v29 = vld [vmem:[%s3160_s6 + $0x70] sm:$0xff] }
 0x120   :  { %668 = vmatpush1.msra.mxu1 %v2608_v31  ;;  %793 = vmatprep.subr.mxu0 %v1986_v53  ;;  %3289 = vst [vmem:[#allocation45_spill] sm:$0xff] %v2636_v29  ;;  %v2643_v31 = vld [vmem:[%s3160_s6 + $0x58] sm:$0xff] }
 0x121   :  { %669 = vmatprep.subr.mxu1 %v2615_v33  ;;  %794 = vmatpush1.msra.mxu0 %v2002_v57  ;;  %3290 = vst [vmem:[#allocation46_spill] sm:$0xff] %v2643_v31  ;;  %v2650_v33 = vld [vmem:[%s3160_s6 + $0x50] sm:$0xff] }
 0x122   :  { %670 = vmatpush1.msra.mxu1 %v2622_v35  ;;  %795 = vmatprep.subr.mxu0 %v2011_v59  ;;  %v2657_v35 = vld [vmem:[%s3160_s6 + $0x38] sm:$0xff] }
 0x123   :  { %671 = vmatprep.subr.mxu1 %v2629_v37  ;;  %796 = vmatpush1.msra.mxu0 %v2019_v61  ;;  %v2664_v37 = vld [vmem:[%s3160_s6 + $0x30] sm:$0xff] }
 0x124   :  { %672 = vmatpush1.msra.mxu1 %v2636_v29  ;;  %797 = vmatprep.subr.mxu0 %v2028_v63  ;;  %v2671_v29 = vld [vmem:[%s3160_s6 + $0x18] sm:$0xff] }
 0x125   :  { %673 = vmatprep.subr.mxu1 %v2643_v31  ;;  %798 = vmatpush1.msra.mxu0 %v2037_v1  ;;  %3291 = vst [vmem:[#allocation47_spill] sm:$0xff] %v2671_v29  ;;  %v2678_v31 = vld [vmem:[%s3160_s6 + $0x10] sm:$0xff] }
 0x126   :  { %674 = vmatpush1.msra.mxu1 %v2650_v33  ;;  %799 = vmatprep.subr.mxu0 %v2105_v32  ;;  %3292 = vst [vmem:[#allocation48_spill] sm:$0xff] %v2678_v31 }
 0x127   :  { %675 = vmatprep.subr.mxu1 %v2657_v35  ;;  %800 = vmatpush1.msra.mxu0 %v2114_v36 }
 0x128   :  { %676 = vmatpush1.msra.mxu1 %v2664_v37  ;;  %801 = vmatprep.subr.mxu0 %v2123_v40 }
 0x129   :  { %677 = vmatprep.subr.mxu1 %v2671_v29  ;;  %802 = vmatpush1.msra.mxu0 %v2132_v44 }
 0x12a   :  { %678 = vmatpush1.msra.mxu1 %v2678_v31  ;;  %803 = vmatprep.subr.mxu0 %v2141_v48 }
 0x12b   :  { %712 = vmatmul.mubr.f32.vlgmr.msra.gmra.mxu1 %v2464_v24  ;;  %898 = vmatprep.subr.mxu1 %v2162_v56  ;;  %v3293_v24 = vld [vmem:[#allocation22_spill] sm:$0xff] }
 0x12c   :  { %899 = vmatpush1.msra.mxu1 %v2178_v5  ;;  %804 = vmatpush1.msra.mxu0 %v2150_v52 }
 0x12d   :  { %900 = vmatprep.subr.mxu1 %v2186_v7  ;;  %837 = vmatprep.mubr.f32.mxu0 %v3275_v10 }
 0x12e   :  { %901 = vmatpush1.msra.mxu1 %v2197_v9  ;;  %962 = vmatprep.mubr.f32.mxu1 %v3275_v10 }
 0x12f   :  { %902 = vmatprep.subr.mxu1 %v2206_v11  ;;  %969 = vmatprep.subr.mxu0 %v2458_v14 }
 0x130   :  { %903 = vmatpush1.msra.mxu1 %v2215_v13 }
 0x131   :  { %904 = vmatprep.subr.mxu1 %v2224_v16 }
 0x132   :  { %905 = vmatpush1.msra.mxu1 %v2233_v21 }
 0x133   :  { %906 = vmatprep.subr.mxu1 %v2242_v26 }
 0x134   :  { %907 = vmatpush1.msra.mxu1 %v2251_v30 }
 0x135   :  { %908 = vmatprep.subr.mxu1 %v2260_v38 }
 0x136   :  { %909 = vmatpush1.msra.mxu1 %v2269_v46 }
 0x137   :  { %910 = vmatprep.subr.mxu1 %v2278_v54  ;;  %v3294_v54 = vld [vmem:[#allocation23_spill] sm:$0xff] }
 0x138   :  { %911 = vmatpush1.msra.mxu1 %v2287_v60  ;;  %v3295_v60 = vld [vmem:[#allocation24_spill] sm:$0xff] }
 0x139   :  { %912 = vmatprep.subr.mxu1 %v2296_v0  ;;  %v3296_v0 = vld [vmem:[#allocation25_spill] sm:$0xff] }
 0x13a   :  { %913 = vmatpush1.msra.mxu1 %v2305_v4  ;;  %v3297_v4 = vld [vmem:[#allocation26_spill] sm:$0xff] }
 0x13b   :  { %914 = vmatprep.subr.mxu1 %v2314_v8  ;;  %v3298_v8 = vld [vmem:[#allocation27_spill] sm:$0xff] }
 0x13c   :  { %915 = vmatpush1.msra.mxu1 %v2323_v12  ;;  %v3299_v12 = vld [vmem:[#allocation28_spill] sm:$0xff] }
 0x13d   :  { %916 = vmatprep.subr.mxu1 %v2332_v19 }
 0x13e   :  { %917 = vmatpush1.msra.mxu1 %v2341_v28 }
 0x13f   :  { %918 = vmatprep.subr.mxu1 %v2350_v42  ;;  %v3300_v42 = vld [vmem:[#allocation31_spill] sm:$0xff] }
 0x140   :  { %919 = vmatpush1.msra.mxu1 %v2359_v55 }
 0x141   :  { %920 = vmatprep.subr.mxu1 %v3293_v24  ;;  %v3221_v24 = vlaneseq }
 0x142   :  { %921 = vmatpush1.msra.mxu1 %v3294_v54 }
 0x143   :  { %922 = vmatprep.subr.mxu1 %v3295_v60  ;;  %v2726_v54 = vshrl.u32 %v3221_v24, 7 }
 0x144   :  { %923 = vmatpush1.msra.mxu1 %v3296_v0 }
 0x145   :  { %924 = vmatprep.subr.mxu1 %v3297_v4  ;;  %v182_v0 = vsub.s32 0, %v2726_v54 }
 0x146   :  { %925 = vmatpush1.msra.mxu1 %v3298_v8  ;;  %v100_v8 = vld [vmem:[%s3158_s4] sm:$0x3] }
 0x147   :  { %926 = vmatprep.subr.mxu1 %v3299_v12  ;;  %v186_v12 = vsub.s32 1, %v2726_v54  ;;  %v2733_v4 = vrot.slane %v100_v8, %v182_v0 }
 0x148   :  { %927 = vmatpush1.msra.mxu1 %v2431_v34 }
 0x149   :  { %928 = vmatprep.subr.mxu1 %v2440_v58  ;;  %3301 = vst [vmem:[#allocation49_spill] sm:$0xff] %v2733_v4  ;;  %v2735_v34 = vrot.slane %v100_v8, %v186_v12  ;;  %v327_v8 = vld [vmem:[%s3161_s7] sm:$0xf] }
 0x14a   :  { %929 = vmatpush1.msra.mxu1 %v3300_v42  ;;  %v336_v55 = vrot.slane %v327_v8, %v186_v12  ;;  %v332_v28 = vrot.slane %v327_v8, %v182_v0 }
 0x14b   :  { %1095 = vmatprep.subr.mxu1 %v1814_v15  ;;  %3302 = vst [vmem:[#allocation50_spill] sm:$0xff] %v2735_v34 }
 0x1a9   :  { %v256_v58 = vpop.f32.mrf.mxu1  ;;  %v415_v60 = vpop.f32.mrf.mxu0 }
 0x1aa   :  { %v257_v42 = vadd.f32 %v256_v58, %v2733_v4  ;;  %v2750_v4 = vadd.f32 %v415_v60, %v332_v28  ;;  %v339_v60 = vsub.s32 2, %v2726_v54 }
 0x1ab   :  { %v258_v15 = vpop.f32.mrf.mxu1  ;;  %v417_v19 = vpop.f32.mrf.mxu0 }
 0x1ac   :  { %261 = vst [vmem:[%s3163_s9] sm:$0xff] %v257_v42  ;;  %v259_v24 = vadd.f32 %v258_v15, %v2735_v34  ;;  %v2748_v58 = vadd.f32 %v417_v19, %v336_v55  ;;  %3304 = vst [vmem:[#allocation52_spill] sm:$0xff] %v2750_v4  ;;  %v564_v15 = vrot.slane %v2750_v4, 3  ;;  %v343_v19 = vsub.s32 3, %v2726_v54 }
 0x1ad   :  { %v340_v55 = vrot.slane %v327_v8, %v339_v60 }
 0x1ae   :  { %262 = vst [vmem:[%s3163_s9 + $0x8] sm:$0xff] %v259_v24  ;;  %3303 = vst [vmem:[#allocation51_spill] sm:$0xff] %v2748_v58  ;;  %v565_v42 = vrot.slane %v2748_v58, 3  ;;  %v572_v38 = vsel %vm558_vm0, %v2750_v4, %v564_v15  ;;  %v344_v21 = vrot.slane %v327_v8, %v343_v19 }
 0x1b0   :  { %v573_v24 = vsel %vm558_vm0, %v2748_v58, %v565_v42 }
 0x1ca   :  { %v642_v46 = vpop.f32.mrf.mxu0  ;;  %v486_v28 = vpop.f32.mrf.mxu1 }
 0x1cb   :  { %v718_v12 = vadd.f32 %v642_v46, %v572_v38  ;;  %v2760_v13 = vadd.f32 %v486_v28, %v340_v55 }
 0x1cc   :  { %v644_v34 = vpop.f32.mrf.mxu0  ;;  %v488_v16 = vpop.f32.mrf.mxu1 }
 0x1cd   :  { %v719_v30 = vadd.f32 %v644_v34, %v573_v24  ;;  %v1543_v26 = vmul.f32 -1.442695, %v718_v12  ;;  %3305 = vst [vmem:[#allocation53_spill] sm:$0xff] %v2760_v13  ;;  %v2762_v58 = vadd.f32 %v488_v16, %v344_v21  ;;  %v566_v38 = vrot.slane %v2760_v13, 3 }
 0x1cf   :  { %v1544_v0 = vmul.f32 -1.442695, %v719_v30  ;;  %v574_v34 = vsel %vm558_vm0, %v2760_v13, %v566_v38 }
 0x1d1   :  { %1601 = vpow2.f32 %v1544_v0 }
 0x1d2   :  { %1603 = vpow2.f32 %v1543_v26  ;;  %v567_v26 = vrot.slane %v2762_v58, 3 }
 0x1d4   :  { %v575_v8 = vsel %vm558_vm0, %v2762_v58, %v567_v26 }
 0x1de   :  { %v1602_v42 = vpop.eup %1601 }
 0x1df   :  { %v1604_v15 = vpop.eup %1603  ;;  %v731_v30 = vadd.f32 1.0, %v1602_v42 }
 0x1e0   :  { %v725_v46 = vadd.f32 1.0, %v1604_v15 }
 0x1e1   :  { %1605 = vrcp.f32 %v731_v30  ;;  %v1704_v30 = vmov 1966171168  }
 0x1e2   :  { %1607 = vrcp.f32 %v725_v46  ;;  %v748_v46 = vunpack.c.l.s4 %v1704_v30  ;;  %v2843_v30 = vld [vmem:[%s3157_s3 + $0xb8] sm:$0xff] }
 0x1e4   :  { %v749_v26 = vunpack.c.0.s8 %v748_v46  ;;  %v2850_v46 = vld [vmem:[%s3157_s3 + $0xb0] sm:$0xff] }
 0x1eb   :  { %v713_v24 = vpop.f32.mrf.mxu1 }
 0x1ec   :  { %v720_v12 = vadd.f32 %v713_v24, %v574_v34  ;;  %v2774_v24 = vsub.s32 %v749_v26, %v2726_v54  ;;  %v3307_v54 = vld [vmem:[#allocation33_spill] sm:$0xff] }
 0x1ed   :  { %v715_v0 = vpop.f32.mrf.mxu1  ;;  %v2857_v26 = vld [vmem:[%s3157_s3 + $0xa8] sm:$0xff] }
 0x1ee   :  { %1609 = vtanh.f32 %v720_v12  ;;  %v721_v16 = vadd.f32 %v715_v0, %v575_v8  ;;  %v1606_v60 = vpop.eup %1605 }
 0x1ef   :  { %v1608_v19 = vpop.eup %1607  ;;  %v741_v55 = vmul.f32 0.0, %v1606_v60  ;;  %v2798_v60 = vld [vmem:[%s3157_s3 + $0xe8] sm:$0xff] }
 0x1f0   :  { %v1545_v21 = vmul.f32 -1.442695, %v721_v16  ;;  %v3306_v16 = vld [vmem:[#allocation32_spill] sm:$0xff] }
 0x1f2   :  { %1611 = vpow2.f32 %v1545_v21  ;;  %v2791_v21 = vld [vmem:[%s3157_s3 + $0xf0] sm:$0xff] }
 0x1fb   :  { %v1610_v28 = vpop.eup %1609 }
 0x1fc   :  { %v742_v42 = vmul.f32 %v1610_v28, %v1608_v19  ;;  %v2808_v19 = vld [vmem:[%s3157_s3 + $0xe0] sm:$0xff]  ;;  %v2815_v28 = vld [vmem:[%s3157_s3 + $0xd8] sm:$0xff] }
 0x1fe   :  { %v2770_v15 = vadd.f32 %v742_v42, %v741_v55  ;;  %v2822_v55 = vld [vmem:[%s3157_s3 + $0xd0] sm:$0xff]  ;;  %v2829_v42 = vld [vmem:[%s3157_s3 + $0xc8] sm:$0xff] }
 0x1ff   :  { %v1612_v38 = vpop.eup %1611 }
 0x200   :  { %v738_v13 = vadd.f32 1.0, %v1612_v38  ;;  %1613 = vtanh.f32 %v2770_v15  ;;  %v2836_v38 = vld [vmem:[%s3157_s3 + $0xc0] sm:$0xff] }
 0x202   :  { %1615 = vrcp.f32 %v738_v13 }
 0x20d   :  { %v1614_v34 = vpop.eup %1613 }
 0x20f   :  { %v1616_v12 = vpop.eup %1615 }
 0x210   :  { %v2776_v8 = vmul.f32 %v1616_v12, %v1614_v34  ;;  %v2864_v34 = vld [vmem:[%s3157_s3 + $0xa0] sm:$0xff]  ;;  %v2871_v12 = vld [vmem:[%s3157_s3 + $0x98] sm:$0xff] }
 0x211   :  { %3308 = vst [vmem:[#allocation32_spill] sm:$0xff] %v2864_v34  ;;  %3309 = vst [vmem:[#allocation33_spill] sm:$0xff] %v2871_v12 }
 0x212   :  { %v753_v0 = vrot.slane %v2776_v8, %v2774_v24  ;;  %838 = vmatmul.mubr.f32.vlgmr.msra.gmra.mxu0 %v2776_v8  ;;  %963 = vmatmul.mubr.f32.vlgmr.msra.gmra.mxu1 %v2776_v8 }
 0x213   :  { %970 = vmatpush1.msra.mxu0 %v3306_v16  ;;  %1033 = vmatprep.mubr.f32.mxu0 %v3275_v10 }
 0x214   :  { %v754_v13 = vcombine.high %v753_v0, %v753_v0  ;;  %1546 = vst.sshfl [vmem:[%s3164_s10] sm:$0x1 pattern:$0x73625140] %v753_v0  ;;  %971 = vmatprep.subr.mxu0 %v3307_v54  ;;  %1096 = vmatpush1.msra.mxu1 %v2791_v21  ;;  %v3310_v0 = vld [vmem:[#allocation35_spill] sm:$0xff] }
 0x215   :  { %972 = vmatpush1.msra.mxu0 %v2482_v2  ;;  %1097 = vmatprep.subr.mxu1 %v2798_v60 }
 0x216   :  { %1547 = vst.sshfl [vmem:[%s3164_s10 + $0x4] sm:$0x1 pattern:$0x73625140] %v754_v13  ;;  %973 = vmatprep.subr.mxu0 %v2489_v3  ;;  %1098 = vmatpush1.msra.mxu1 %v2808_v19  ;;  %v3311_v13 = vld [vmem:[#allocation36_spill] sm:$0xff] }
 0x217   :  { %974 = vmatpush1.msra.mxu0 %v2496_v6  ;;  %1099 = vmatprep.subr.mxu1 %v2815_v28 }
 0x218   :  { %975 = vmatprep.subr.mxu0 %v2503_v50  ;;  %1100 = vmatpush1.msra.mxu1 %v2822_v55 }
 0x219   :  { %976 = vmatpush1.msra.mxu0 %v2510_v62  ;;  %1101 = vmatprep.subr.mxu1 %v2829_v42 }
 0x21a   :  { %977 = vmatprep.subr.mxu0 %v2517_v17  ;;  %1102 = vmatpush1.msra.mxu1 %v2836_v38 }
 0x21b   :  { %978 = vmatpush1.msra.mxu0 %v2524_v18  ;;  %1103 = vmatprep.subr.mxu1 %v2843_v30 }
 0x21c   :  { %979 = vmatprep.subr.mxu0 %v2531_v20  ;;  %1104 = vmatpush1.msra.mxu1 %v2850_v46 }
 0x21d   :  { %980 = vmatpush1.msra.mxu0 %v2538_v22  ;;  %1105 = vmatprep.subr.mxu1 %v2857_v26 }
 0x21e   :  { %981 = vmatprep.subr.mxu0 %v2545_v23  ;;  %1106 = vmatpush1.msra.mxu1 %v2864_v34  ;;  %v3313_v34 = vld [vmem:[#allocation38_spill] sm:$0xff] }
 0x21f   :  { %982 = vmatpush1.msra.mxu0 %v2552_v25  ;;  %1107 = vmatprep.subr.mxu1 %v2871_v12  ;;  %v3312_v25 = vld [vmem:[#allocation37_spill] sm:$0xff]  ;;  %v3314_v12 = vld [vmem:[#allocation39_spill] sm:$0xff] }
 0x220   :  { %983 = vmatprep.subr.mxu0 %v2559_v27  ;;  %1108 = vmatpush1.msra.mxu1 %v1923_v39  ;;  %v3315_v39 = vld [vmem:[#allocation40_spill] sm:$0xff] }
 0x221   :  { %984 = vmatpush1.msra.mxu0 %v3310_v0  ;;  %1109 = vmatprep.subr.mxu1 %v1932_v41  ;;  %v3316_v41 = vld [vmem:[#allocation41_spill] sm:$0xff] }
 0x222   :  { %985 = vmatprep.subr.mxu0 %v3311_v13  ;;  %1110 = vmatpush1.msra.mxu1 %v1941_v43  ;;  %v3317_v43 = vld [vmem:[#allocation42_spill] sm:$0xff] }
 0x223   :  { %986 = vmatpush1.msra.mxu0 %v3312_v25  ;;  %1111 = vmatprep.subr.mxu1 %v1950_v45  ;;  %v3318_v45 = vld [vmem:[#allocation43_spill] sm:$0xff] }
 0x224   :  { %987 = vmatprep.subr.mxu0 %v3313_v34  ;;  %1112 = vmatpush1.msra.mxu1 %v1959_v47  ;;  %v3319_v47 = vld [vmem:[#allocation44_spill] sm:$0xff] }
 0x225   :  { %988 = vmatpush1.msra.mxu0 %v3314_v12  ;;  %1113 = vmatprep.subr.mxu1 %v1968_v49  ;;  %v3320_v49 = vld [vmem:[#allocation45_spill] sm:$0xff] }
 0x226   :  { %989 = vmatprep.subr.mxu0 %v3315_v39  ;;  %1114 = vmatpush1.msra.mxu1 %v1977_v51  ;;  %v3321_v51 = vld [vmem:[#allocation46_spill] sm:$0xff] }
 0x227   :  { %990 = vmatpush1.msra.mxu0 %v3316_v41  ;;  %1115 = vmatprep.subr.mxu1 %v1986_v53  ;;  %v3322_v53 = vld [vmem:[#allocation5_spill] sm:$0xff] }
 0x228   :  { %991 = vmatprep.subr.mxu0 %v3317_v43  ;;  %1116 = vmatpush1.msra.mxu1 %v2002_v57  ;;  %v3323_v57 = vld [vmem:[#allocation6_spill] sm:$0xff] }
 0x229   :  { %992 = vmatpush1.msra.mxu0 %v3318_v45  ;;  %1117 = vmatprep.subr.mxu1 %v2011_v59  ;;  %v3324_v59 = vld [vmem:[#allocation7_spill] sm:$0xff] }
 0x22a   :  { %993 = vmatprep.subr.mxu0 %v3319_v47  ;;  %1118 = vmatpush1.msra.mxu1 %v2019_v61  ;;  %v3325_v61 = vld [vmem:[#allocation8_spill] sm:$0xff] }
 0x22b   :  { %994 = vmatpush1.msra.mxu0 %v3320_v49  ;;  %1119 = vmatprep.subr.mxu1 %v2028_v63  ;;  %v3326_v63 = vld [vmem:[#allocation9_spill] sm:$0xff] }
 0x22c   :  { %995 = vmatprep.subr.mxu0 %v3321_v51  ;;  %1120 = vmatpush1.msra.mxu1 %v2037_v1  ;;  %v3327_v1 = vld [vmem:[#allocation10_spill] sm:$0xff] }
 0x22d   :  { %996 = vmatpush1.msra.mxu0 %v2650_v33  ;;  %1121 = vmatprep.subr.mxu1 %v2105_v32  ;;  %v3328_v32 = vld [vmem:[#allocation11_spill] sm:$0xff] }
 0x22e   :  { %997 = vmatprep.subr.mxu0 %v2657_v35  ;;  %1122 = vmatpush1.msra.mxu1 %v2114_v36  ;;  %v3329_v36 = vld [vmem:[#allocation12_spill] sm:$0xff] }
 0x22f   :  { %998 = vmatpush1.msra.mxu0 %v2664_v37  ;;  %1123 = vmatprep.subr.mxu1 %v2123_v40  ;;  %v3330_v40 = vld [vmem:[#allocation13_spill] sm:$0xff] }
 0x230   :  { %999 = vmatprep.subr.mxu0 %v2671_v29  ;;  %1124 = vmatpush1.msra.mxu1 %v2132_v44  ;;  %v3331_v44 = vld [vmem:[#allocation14_spill] sm:$0xff] }
 0x231   :  { %1000 = vmatpush1.msra.mxu0 %v2678_v31  ;;  %1125 = vmatprep.subr.mxu1 %v2141_v48  ;;  %v3332_v48 = vld [vmem:[#allocation15_spill] sm:$0xff] }
 0x232   :  { %1034 = vmatmul.mubr.f32.vlgmr.msra.gmra.mxu0 %v2776_v8  ;;  %1217 = vmatprep.subr.mxu0 %v2162_v56  ;;  %v3334_v56 = vld [vmem:[#allocation17_spill] sm:$0xff]  ;;  %v3340_v8 = vld [vmem:[#allocation23_spill] sm:$0xff] }
 0x233   :  { %1218 = vmatpush1.msra.mxu0 %v2178_v5  ;;  %1126 = vmatpush1.msra.mxu1 %v2150_v52  ;;  %v3333_v52 = vld [vmem:[#allocation16_spill] sm:$0xff]  ;;  %v3335_v5 = vld [vmem:[#allocation18_spill] sm:$0xff] }
 0x234   :  { %1219 = vmatprep.subr.mxu0 %v2186_v7  ;;  %1159 = vmatprep.mubr.f32.mxu1 %v3275_v10  ;;  %v3336_v7 = vld [vmem:[#allocation19_spill] sm:$0xff] }
 0x235   :  { %1220 = vmatpush1.msra.mxu0 %v2197_v9  ;;  %1281 = vmatprep.mubr.f32.mxu0 %v3275_v10  ;;  %v3337_v9 = vld [vmem:[#allocation20_spill] sm:$0xff] }
 0x236   :  { %1221 = vmatprep.subr.mxu0 %v2206_v11  ;;  %1288 = vmatprep.subr.mxu1 %v2458_v14  ;;  %v3338_v11 = vld [vmem:[#allocation21_spill] sm:$0xff]  ;;  %v3339_v14 = vld [vmem:[#allocation22_spill] sm:$0xff] }
 0x237   :  { %1222 = vmatpush1.msra.mxu0 %v3322_v53  ;;  %v3341_v53 = vld [vmem:[#allocation24_spill] sm:$0xff] }
 0x238   :  { %1223 = vmatprep.subr.mxu0 %v3323_v57  ;;  %v3342_v57 = vld [vmem:[#allocation25_spill] sm:$0xff] }
 0x239   :  { %1224 = vmatpush1.msra.mxu0 %v3324_v59  ;;  %v3343_v59 = vld [vmem:[#allocation26_spill] sm:$0xff] }
 0x23a   :  { %1225 = vmatprep.subr.mxu0 %v3325_v61  ;;  %v3344_v61 = vld [vmem:[#allocation27_spill] sm:$0xff] }
 0x23b   :  { %1226 = vmatpush1.msra.mxu0 %v3326_v63  ;;  %v3345_v63 = vld [vmem:[#allocation28_spill] sm:$0xff] }
 0x23c   :  { %1227 = vmatprep.subr.mxu0 %v3327_v1  ;;  %v3346_v1 = vld [vmem:[#allocation29_spill] sm:$0xff] }
 0x23d   :  { %1228 = vmatpush1.msra.mxu0 %v3328_v32  ;;  %v3347_v32 = vld [vmem:[#allocation30_spill] sm:$0xff] }
 0x23e   :  { %1229 = vmatprep.subr.mxu0 %v3329_v36  ;;  %v3348_v36 = vld [vmem:[#allocation31_spill] sm:$0xff] }
 0x23f   :  { %1230 = vmatpush1.msra.mxu0 %v3330_v40  ;;  %v1661_v40 = vld [vmem:[%s3157_s3 + $0xf8] sm:$0xff] }
 0x240   :  { %1231 = vmatprep.subr.mxu0 %v3331_v44 }
 0x241   :  { %1232 = vmatpush1.msra.mxu0 %v3332_v48 }
 0x242   :  { %1233 = vmatprep.subr.mxu0 %v3333_v52  ;;  %v3349_v52 = vld [vmem:[#allocation51_spill] sm:$0xff] }
 0x243   :  { %1234 = vmatpush1.msra.mxu0 %v3334_v56  ;;  %v879_v56 = vrot.slane %v3349_v52, 1 }
 0x244   :  { %1235 = vmatprep.subr.mxu0 %v3335_v5  ;;  %v887_v5 = vrot.slane %v3349_v52, 4  ;;  %v3352_v52 = vlaneseq }
 0x245   :  { %1236 = vmatpush1.msra.mxu0 %v3336_v7  ;;  %v878_v7 = vrot.slane %v2750_v4, 1 }
 0x246   :  { %1237 = vmatprep.subr.mxu0 %v3337_v9  ;;  %v886_v9 = vrot.slane %v2750_v4, 4  ;;  %vm2960_vm1 = vcmp.lt.s32.totalorder %v3352_v52, 256 }
 0x247   :  { %1238 = vmatpush1.msra.mxu0 %v3338_v11 }
 0x248   :  { %1239 = vmatprep.subr.mxu0 %v3339_v14 }
 0x249   :  { %1240 = vmatpush1.msra.mxu0 %v3340_v8  ;;  %v3350_v8 = vld [vmem:[#allocation49_spill] sm:$0xff] }
 0x24a   :  { %1241 = vmatprep.subr.mxu0 %v3341_v53 }
 0x24b   :  { %1242 = vmatpush1.msra.mxu0 %v3342_v57  ;;  %v3351_v57 = vld [vmem:[#allocation50_spill] sm:$0xff] }
 0x24c   :  { %1243 = vmatprep.subr.mxu0 %v3343_v59 }
 0x24d   :  { %1244 = vmatpush1.msra.mxu0 %v3344_v61  ;;  %v895_v61 = vsel %vm558_vm0, %v879_v56, %v887_v5  ;;  %v3355_v56 = vld [vmem:[#allocation53_spill] sm:$0xff] }
 0x24e   :  { %1245 = vmatprep.subr.mxu0 %v3345_v63  ;;  %v894_v63 = vsel %vm558_vm0, %v878_v7, %v886_v9  ;;  %v880_v5 = vrot.slane %v3355_v56, 1 }
 0x24f   :  { %1246 = vmatpush1.msra.mxu0 %v3346_v1 }
 0x250   :  { %1247 = vmatprep.subr.mxu0 %v3347_v32 }
 0x251   :  { %1248 = vmatpush1.msra.mxu0 %v3348_v36 }
 0x252   :  { %1414 = vmatprep.subr.mxu0 %v1661_v40 }
 0x2d2   :  { %v839_v44 = vpop.f32.mrf.mxu0  ;;  %v964_v48 = vpop.f32.mrf.mxu1 }
 0x2d3   :  { %v840_v53 = vadd.f32 %v839_v44, %v3350_v8  ;;  %v1040_v36 = vadd.f32 %v964_v48, %v894_v63 }
 0x2d4   :  { %v841_v11 = vpop.f32.mrf.mxu0  ;;  %v966_v14 = vpop.f32.mrf.mxu1 }
 0x2d5   :  { %v842_v59 = vadd.f32 %v841_v11, %v3351_v57  ;;  %v1041_v32 = vadd.f32 %v966_v14, %v895_v61  ;;  %v1549_v8 = vmul.f32 -1.442695, %v1040_v36  ;;  %v881_v14 = vrot.slane %v2762_v58, 1 }
 0x2d7   :  { %v846_v1 = vcombine.low %v840_v53, %v842_v59  ;;  %v1550_v44 = vmul.f32 -1.442695, %v1041_v32 }
 0x2d9   :  { %v853_v40 = vrot.slane %v846_v1, %v2774_v24  ;;  %1617 = vpow2.f32 %v1550_v44 }
 0x2da   :  { %1619 = vpow2.f32 %v1549_v8 }
 0x2db   :  { %v854_v4 = vcombine.high %v853_v40, %v853_v40  ;;  %v861_v29 = vrot.slane %v853_v40, %v2774_v24 }
 0x2dd   :  { %v868_v11 = vrot.slane %v854_v4, %v2774_v24  ;;  %875 = vst.msk [vmem:[%s3165_s11] ss:$4 sm:$0x3] %vm2960_vm1, %v861_v29  ;;  %v888_v4 = vrot.slane %v3355_v56, 4  ;;  %v889_v29 = vrot.slane %v2762_v58, 4 }
 0x2df   :  { %1548 = vst.msk [vmem:[%s3165_s11 + $0x8] ss:$4 sm:$0x3] %vm2960_vm1, %v868_v11  ;;  %v896_v53 = vsel %vm558_vm0, %v880_v5, %v888_v4  ;;  %v897_v8 = vsel %vm558_vm0, %v881_v14, %v889_v29 }
 0x2e6   :  { %v1618_v48 = vpop.eup %1617 }
 0x2e7   :  { %v1620_v52 = vpop.eup %1619  ;;  %v1053_v7 = vadd.f32 1.0, %v1618_v48 }
 0x2e8   :  { %v1047_v9 = vadd.f32 1.0, %v1620_v52 }
 0x2e9   :  { %1621 = vrcp.f32 %v1053_v7 }
 0x2ea   :  { %1623 = vrcp.f32 %v1047_v9 }
 0x2f2   :  { %v1035_v59 = vpop.f32.mrf.mxu0 }
 0x2f3   :  { %v1042_v61 = vadd.f32 %v1035_v59, %v896_v53 }
 0x2f4   :  { %v1037_v63 = vpop.f32.mrf.mxu0 }
 0x2f5   :  { %1625 = vtanh.f32 %v1042_v61  ;;  %v1043_v1 = vadd.f32 %v1037_v63, %v897_v8 }
 0x2f6   :  { %v1622_v36 = vpop.eup %1621 }
 0x2f7   :  { %v1551_v32 = vmul.f32 -1.442695, %v1043_v1  ;;  %v1624_v40 = vpop.eup %1623  ;;  %v1063_v11 = vmul.f32 %v1622_v36, %v2770_v15 }
 0x2f9   :  { %1627 = vpow2.f32 %v1551_v32 }
 0x302   :  { %v1626_v44 = vpop.eup %1625 }
 0x303   :  { %v1064_v48 = vmul.f32 %v1626_v44, %v1624_v40 }
 0x305   :  { %v2983_v52 = vadd.f32 %v1064_v48, %v1063_v11  ;;  %v1199_v48 = vrot.slane %v3355_v56, 2 }
 0x306   :  { %v1628_v5 = vpop.eup %1627 }
 0x307   :  { %v1060_v4 = vadd.f32 1.0, %v1628_v5  ;;  %1629 = vtanh.f32 %v2983_v52  ;;  %v1207_v5 = vrot.slane %v3355_v56, 5 }
 0x309   :  { %1631 = vrcp.f32 %v1060_v4 }
 0x314   :  { %v1630_v7 = vpop.eup %1629 }
 0x316   :  { %v1632_v9 = vpop.eup %1631 }
 0x317   :  { %v2986_v14 = vmul.f32 %v1632_v9, %v1630_v7  ;;  %v1200_v9 = vrot.slane %v2762_v58, 2 }
 0x319   :  { %v1075_v29 = vrot.slane %v2986_v14, %v2774_v24  ;;  %1160 = vmatmul.mubr.f32.vlgmr.msra.gmra.mxu1 %v2986_v14  ;;  %1282 = vmatmul.mubr.f32.vlgmr.msra.gmra.mxu0 %v2986_v14 }
 0x31a   :  { %1289 = vmatpush1.msra.mxu1 %v3306_v16  ;;  %1352 = vmatprep.mubr.f32.mxu1 %v3275_v10  ;;  %v1671_v16 = vld [vmem:[%s3157_s3 + $0x48] sm:$0xff] }
 0x31b   :  { %v1076_v15 = vcombine.high %v1075_v29, %v1075_v29  ;;  %1552 = vst.sshfl [vmem:[%s3164_s10 + $0x1] sm:$0x1 pattern:$0x73625140] %v1075_v29  ;;  %1290 = vmatprep.subr.mxu1 %v3307_v54  ;;  %1415 = vmatpush1.msra.mxu0 %v2791_v21  ;;  %v1672_v54 = vld [vmem:[%s3157_s3 + $0x40] sm:$0xff]  ;;  %v1673_v21 = vld [vmem:[%s3157_s3 + $0x38] sm:$0xff]  ;;  %v1215_v29 = vsel %vm558_vm0, %v1199_v48, %v1207_v5 }
 0x31c   :  { %1291 = vmatpush1.msra.mxu1 %v2482_v2  ;;  %1416 = vmatprep.subr.mxu0 %v2798_v60  ;;  %v1662_v2 = vld [vmem:[%s3157_s3 + $0x90] sm:$0xff] }
 0x31d   :  { %1553 = vst.sshfl [vmem:[%s3164_s10 + $0x5] sm:$0x1 pattern:$0x73625140] %v1076_v15  ;;  %1292 = vmatprep.subr.mxu1 %v2489_v3  ;;  %1417 = vmatpush1.msra.mxu0 %v2808_v19  ;;  %v1663_v3 = vld [vmem:[%s3157_s3 + $0x88] sm:$0xff]  ;;  %v1674_v60 = vld [vmem:[%s3157_s3 + $0x30] sm:$0xff] }
 0x31e   :  { %1293 = vmatpush1.msra.mxu1 %v2496_v6  ;;  %1418 = vmatprep.subr.mxu0 %v2815_v28  ;;  %v3356_v6 = vld [vmem:[#allocation32_spill] sm:$0xff]  ;;  %v1675_v19 = vld [vmem:[%s3157_s3 + $0x28] sm:$0xff] }
 0x31f   :  { %1294 = vmatprep.subr.mxu1 %v2503_v50  ;;  %1419 = vmatpush1.msra.mxu0 %v2822_v55  ;;  %v3357_v50 = vld [vmem:[#allocation34_spill] sm:$0xff]  ;;  %v1676_v28 = vld [vmem:[%s3157_s3 + $0x20] sm:$0xff]  ;;  %v1677_v55 = vld [vmem:[%s3157_s3 + $0x18] sm:$0xff] }
 0x320   :  { %1295 = vmatpush1.msra.mxu1 %v2510_v62  ;;  %1420 = vmatprep.subr.mxu0 %v2829_v42  ;;  %v3358_v62 = vld [vmem:[#allocation33_spill] sm:$0xff]  ;;  %v1678_v42 = vld [vmem:[%s3157_s3 + $0x10] sm:$0xff] }
 0x321   :  { %1296 = vmatprep.subr.mxu1 %v2517_v17  ;;  %1421 = vmatpush1.msra.mxu0 %v2836_v38  ;;  %v1664_v17 = vld [vmem:[%s3157_s3 + $0x80] sm:$0xff]  ;;  %v1679_v38 = vld [vmem:[%s3157_s3 + $0x8] sm:$0xff] }
 0x322   :  { %1297 = vmatpush1.msra.mxu1 %v2524_v18  ;;  %1422 = vmatprep.subr.mxu0 %v2843_v30  ;;  %v1665_v18 = vld [vmem:[%s3157_s3 + $0x78] sm:$0xff] }
 0x323   :  { %1298 = vmatprep.subr.mxu1 %v2531_v20  ;;  %1423 = vmatpush1.msra.mxu0 %v2850_v46  ;;  %v1666_v20 = vld [vmem:[%s3157_s3 + $0x70] sm:$0xff] }
 0x324   :  { %1299 = vmatpush1.msra.mxu1 %v2538_v22  ;;  %1424 = vmatprep.subr.mxu0 %v2857_v26  ;;  %v1667_v22 = vld [vmem:[%s3157_s3 + $0x68] sm:$0xff]  ;;  %v3361_v26 = vld [vmem:[#allocation51_spill] sm:$0xff] }
 0x325   :  { %1300 = vmatprep.subr.mxu1 %v2545_v23  ;;  %1425 = vmatpush1.msra.mxu0 %v3356_v6  ;;  %v1668_v23 = vld [vmem:[%s3157_s3 + $0x60] sm:$0xff] }
 0x326   :  { %1301 = vmatpush1.msra.mxu1 %v3357_v50  ;;  %1426 = vmatprep.subr.mxu0 %v3358_v62 }
 0x327   :  { %1302 = vmatprep.subr.mxu1 %v2559_v27  ;;  %1427 = vmatpush1.msra.mxu0 %v1662_v2  ;;  %v1670_v27 = vld [vmem:[%s3157_s3 + $0x50] sm:$0xff] }
 0x328   :  { %1303 = vmatpush1.msra.mxu1 %v3310_v0  ;;  %1428 = vmatprep.subr.mxu0 %v1663_v3  ;;  %v3362_v0 = vld [vmem:[#allocation52_spill] sm:$0xff] }
 0x329   :  { %1304 = vmatprep.subr.mxu1 %v3311_v13  ;;  %1429 = vmatpush1.msra.mxu0 %v1664_v17  ;;  %v1197_v13 = vrot.slane %v3362_v0, 2 }
 0x32a   :  { %1305 = vmatpush1.msra.mxu1 %v3312_v25  ;;  %1430 = vmatprep.subr.mxu0 %v1665_v18  ;;  %v1669_v25 = vld [vmem:[%s3157_s3 + $0x58] sm:$0xff] }
 0x32b   :  { %1306 = vmatprep.subr.mxu1 %v3313_v34  ;;  %1431 = vmatpush1.msra.mxu0 %v1666_v20  ;;  %v1198_v34 = vrot.slane %v3361_v26, 2 }
 0x32c   :  { %1307 = vmatpush1.msra.mxu1 %v3314_v12  ;;  %1432 = vmatprep.subr.mxu0 %v1667_v22  ;;  %v1206_v12 = vrot.slane %v3361_v26, 5 }
 0x32d   :  { %1308 = vmatprep.subr.mxu1 %v3315_v39  ;;  %1433 = vmatpush1.msra.mxu0 %v1668_v23  ;;  %v1205_v39 = vrot.slane %v3362_v0, 5 }
 0x32e   :  { %1309 = vmatpush1.msra.mxu1 %v3316_v41  ;;  %1434 = vmatprep.subr.mxu0 %v1669_v25 }
 0x32f   :  { %1310 = vmatprep.subr.mxu1 %v3317_v43  ;;  %1435 = vmatpush1.msra.mxu0 %v1670_v27 }
 0x330   :  { %1311 = vmatpush1.msra.mxu1 %v3318_v45  ;;  %1436 = vmatprep.subr.mxu0 %v1671_v16  ;;  %v3363_v45 = vld [vmem:[#allocation49_spill] sm:$0xff] }
 0x331   :  { %1312 = vmatprep.subr.mxu1 %v3319_v47  ;;  %1437 = vmatpush1.msra.mxu0 %v1672_v54 }
 0x332   :  { %1313 = vmatpush1.msra.mxu1 %v3320_v49  ;;  %1438 = vmatprep.subr.mxu0 %v1673_v21 }
 0x333   :  { %1314 = vmatprep.subr.mxu1 %v3321_v51  ;;  %1439 = vmatpush1.msra.mxu0 %v1674_v60  ;;  %v1214_v51 = vsel %vm558_vm0, %v1198_v34, %v1206_v12 }
 0x334   :  { %1315 = vmatpush1.msra.mxu1 %v2650_v33  ;;  %1440 = vmatprep.subr.mxu0 %v1675_v19  ;;  %v3359_v33 = vld [vmem:[#allocation47_spill] sm:$0xff] }
 0x335   :  { %1316 = vmatprep.subr.mxu1 %v2657_v35  ;;  %1441 = vmatpush1.msra.mxu0 %v1676_v28  ;;  %v3360_v35 = vld [vmem:[#allocation48_spill] sm:$0xff] }
 0x336   :  { %1317 = vmatpush1.msra.mxu1 %v2664_v37  ;;  %1442 = vmatprep.subr.mxu0 %v1677_v55  ;;  %v1680_v37 = vld [vmem:[%s3157_s3] sm:$0xff] }
 0x337   :  { %1318 = vmatprep.subr.mxu1 %v3359_v33  ;;  %1443 = vmatpush1.msra.mxu0 %v1678_v42 }
 0x338   :  { %1319 = vmatpush1.msra.mxu1 %v3360_v35  ;;  %1444 = vmatprep.subr.mxu0 %v1679_v38 }
 0x339   :  { %1353 = vmatmul.mubr.f32.vlgmr.msra.gmra.mxu1 %v2986_v14  ;;  %1445 = vmatpush1.msra.mxu0 %v1680_v37  ;;  %v1208_v14 = vrot.slane %v2762_v58, 5 }
 0x33a   :  { %1478 = vmatprep.mubr.f32.mxu0 %v3275_v10  ;;  %v1213_v10 = vsel %vm558_vm0, %v1197_v13, %v1205_v39 }
 0x33b   :  { %v1216_v50 = vsel %vm558_vm0, %v1200_v9, %v1208_v14 }
 0x3d9   :  { %v1161_v30 = vpop.f32.mrf.mxu1  ;;  %v1283_v46 = vpop.f32.mrf.mxu0 }
 0x3da   :  { %v1162_v47 = vadd.f32 %v1161_v30, %v3363_v45  ;;  %v1359_v61 = vadd.f32 %v1283_v46, %v1213_v10 }
 0x3db   :  { %v1163_v41 = vpop.f32.mrf.mxu1  ;;  %v1285_v43 = vpop.f32.mrf.mxu0 }
 0x3dc   :  { %v1164_v49 = vadd.f32 %v1163_v41, %v3351_v57  ;;  %v1360_v59 = vadd.f32 %v1285_v43, %v1214_v51  ;;  %v1556_v36 = vmul.f32 -1.442695, %v1359_v61 }
 0x3de   :  { %v1168_v53 = vcombine.low %v1162_v47, %v1164_v49  ;;  %v1557_v32 = vmul.f32 -1.442695, %v1360_v59 }
 0x3e0   :  { %v1175_v8 = vrot.slane %v1168_v53, %v2774_v24  ;;  %1633 = vpow2.f32 %v1557_v32 }
 0x3e1   :  { %1635 = vpow2.f32 %v1556_v36 }
 0x3e2   :  { %v1176_v63 = vcombine.high %v1175_v8, %v1175_v8  ;;  %v1183_v1 = vrot.slane %v1175_v8, %v2774_v24 }
 0x3e4   :  { %v1190_v40 = vrot.slane %v1176_v63, %v2774_v24  ;;  %1554 = vst.msk [vmem:[%s3165_s11 + $0x1] ss:$4 sm:$0x3] %vm2960_vm1, %v1183_v1 }
 0x3e6   :  { %1555 = vst.msk [vmem:[%s3165_s11 + $0x9] ss:$4 sm:$0x3] %vm2960_vm1, %v1190_v40 }
 0x3ed   :  { %v1634_v44 = vpop.eup %1633 }
 0x3ee   :  { %v1636_v11 = vpop.eup %1635  ;;  %v1372_v4 = vadd.f32 1.0, %v1634_v44 }
 0x3ef   :  { %v1366_v7 = vadd.f32 1.0, %v1636_v11 }
 0x3f0   :  { %1637 = vrcp.f32 %v1372_v4 }
 0x3f1   :  { %1639 = vrcp.f32 %v1366_v7 }
 0x3f9   :  { %v1354_v15 = vpop.f32.mrf.mxu1 }
 0x3fa   :  { %v1361_v6 = vadd.f32 %v1354_v15, %v1215_v29 }
 0x3fb   :  { %v1356_v62 = vpop.f32.mrf.mxu1 }
 0x3fc   :  { %1641 = vtanh.f32 %v1361_v6  ;;  %v1362_v2 = vadd.f32 %v1356_v62, %v1216_v50 }
 0x3fd   :  { %v1638_v56 = vpop.eup %1637 }
 0x3fe   :  { %v1558_v3 = vmul.f32 -1.442695, %v1362_v2  ;;  %v1640_v17 = vpop.eup %1639  ;;  %v1382_v20 = vmul.f32 %v1638_v56, %v2983_v52 }
 0x400   :  { %1643 = vpow2.f32 %v1558_v3 }
 0x409   :  { %v1642_v18 = vpop.eup %1641 }
 0x40a   :  { %v1383_v22 = vmul.f32 %v1642_v18, %v1640_v17 }
 0x40c   :  { %v1384_v58 = vadd.f32 %v1383_v22, %v1382_v20 }
 0x40d   :  { %v1644_v23 = vpop.eup %1643 }
 0x40e   :  { %v1379_v25 = vadd.f32 1.0, %v1644_v23  ;;  %1645 = vtanh.f32 %v1384_v58 }
 0x410   :  { %1647 = vrcp.f32 %v1379_v25 }
 0x41b   :  { %v1646_v27 = vpop.eup %1645 }
 0x41d   :  { %v1648_v16 = vpop.eup %1647 }
 0x41e   :  { %v1386_v54 = vmul.f32 %v1648_v16, %v1646_v27 }
 0x420   :  { %v1394_v21 = vrot.slane %v1386_v54, %v2774_v24  ;;  %1479 = vmatmul.mubr.f32.vlgmr.msra.gmra.mxu0 %v1386_v54 }
 0x422   :  { %v1395_v60 = vcombine.high %v1394_v21, %v1394_v21  ;;  %1559 = vst.sshfl [vmem:[%s3164_s10 + $0x2] sm:$0x1 pattern:$0x73625140] %v1394_v21 }
 0x424   :  { %1560 = vst.sshfl [vmem:[%s3164_s10 + $0x6] sm:$0x1 pattern:$0x73625140] %v1395_v60 }
 0x425   :  { %1692 = shalt.err (!%p1689_p4)
}
 0x426   :  { %1525 = dma.vmem_to_hbm [thread:$0]  %s1523_s5, 128, %s3162_s8, [#allocation3]  }
 0x4e0   :  { %v1480_v52 = vpop.f32.mrf.mxu0 }
 0x4e1   :  { %v1481_v28 = vadd.f32 %v1480_v52, %v3363_v45 }
 0x4e2   :  { %v1482_v19 = vpop.f32.mrf.mxu0 }
 0x4e3   :  { %v1483_v55 = vadd.f32 %v1482_v19, %v3351_v57 }
 0x4e5   :  { %v1487_v33 = vcombine.low %v1481_v28, %v1483_v55 }
 0x4e7   :  { %v1494_v42 = vrot.slane %v1487_v33, %v2774_v24 }
 0x4e9   :  { %v1495_v35 = vcombine.high %v1494_v42, %v1494_v42  ;;  %v1502_v38 = vrot.slane %v1494_v42, %v2774_v24 }
 0x4eb   :  { %v1509_v37 = vrot.slane %v1495_v35, %v2774_v24  ;;  %1561 = vst.msk [vmem:[%s3165_s11 + $0x2] ss:$4 sm:$0x3] %vm2960_vm1, %v1502_v38 }
 0x4ed   :  { %1562 = vst.msk [vmem:[%s3165_s11 + $0xa] ss:$4 sm:$0x3] %vm2960_vm1, %v1509_v37 }
 0x4ee   :  { %1701 = dma.done.wait [#allocation3], 128  }
 0x4ef   :  { %1702 = vsyncadd [#allocation3], 4294967168 }
 0x4f0   :  { %1541 = vsyncpa [#allocation3], 1 }

</bundles_post_ra>
